<compile_context>
chip_gen: v5e
topology: v5e:2x2
jax: 0.10.0
libtpu: 0.0.40
codegen_flags: <defaults>
</compile_context>

<pallas_src>
import functools

import jax
import jax.numpy as jnp
from jax.experimental import pallas as pl
from jax.experimental.pallas import tpu as pltpu

NEG_SLOPE = 0.01  # nn.LeakyReLU default


def _leaky_relu(x):
    return jnp.where(x > 0, x, NEG_SLOPE * x)


def _choose_b_tile(B, R, target_rows=128):
    """Largest divisor of B with B_TILE*R <= ~128 rows, keeping >=2 grid steps
    when possible (so both TensorCores on v7x get work)."""
    divisors = [d for d in range(1, B + 1) if B % d == 0]
    cands = [d for d in divisors if d * R <= max(target_rows, R)]
    if not cands:
        cands = [1]
    bt = max(cands)
    if B // bt < 2 and bt > 1:
        smaller = [d for d in cands if B // d >= 2]
        if smaller:
            bt = max(smaller)
    return bt


# ----------------------- fused ALFRED kernel (per tile) ----------------------
def alfred_fused_kernel(
    fi_ref, fe_ref, ft_ref,                     # activations (B_TILE, R/L, H)
    w12_ref, b12_ref,                           # packed GMF linear_1/linear_2
    wp12_ref,                                   # packed LRBP proj1/proj2
    wp_ref, bp_ref,                             # LRBP proj
    w1h_ref, b1h_ref,                           # fc1 (2H -> H)
    w2h_ref, b2h_ref,                           # fc2 (H -> C_pad, zero-padded)
    out_ref,
):
    bf = jnp.bfloat16
    bt, R, H = fi_ref.shape
    L = ft_ref.shape[1]
    M = bt * R

    # Fold batch into the matmul M dimension.
    f_i = fi_ref[...].reshape(M, H)             # (M, H) f32
    f_e = fe_ref[...].reshape(M, H)             # (M, H) f32

    # ---------------- GMF (packed 256-wide: [f_e | f_i] @ blockdiag(w1,w2)) --
    lhs = jnp.concatenate([f_e, f_i], axis=-1).astype(bf)           # (M, 2H)
    h12 = jnp.tanh(
        jnp.dot(lhs, w12_ref[...], preferred_element_type=jnp.float32)
        + b12_ref[...])                                             # (M, 2H) f32
    f_e_p = h12[:, :H]                          # tanh(linear_1(f_e))
    f_i_p = h12[:, H:]                          # tanh(linear_2(f_i))

    # ---------------- LRBP (packed: [f_e_p | f_i_p] @ [[0,wp2],[wp1,0]]) -----
    x12 = _leaky_relu(
        jnp.dot(h12.astype(bf), wp12_ref[...],
                preferred_element_type=jnp.float32))                # [x1 | x2]
    prod = x12[:, :H] * x12[:, H:]                                  # x1 * x2
    g = jax.nn.sigmoid(
        jnp.dot(prod.astype(bf), wp_ref[...],
                preferred_element_type=jnp.float32) + bp_ref[...])
    f_ei = g * f_e_p + (1.0 - g) * f_i_p                            # (M, H)

    # -------- Gated Cross Attention (exact closed form) + head pooling ------
    # z.sum(dim=1) = [ R * mean_L f_t  |  sum_R f_ei ]  per batch element.
    s1 = jnp.sum(ft_ref[...], axis=1) * (float(R) / float(L))       # (bt, H)
    s2 = jnp.sum(f_ei.reshape(bt, R, H), axis=1)                    # (bt, H)
    joint = jnp.concatenate([s1, s2], axis=-1).astype(bf)           # (bt, 2H)

    # ----------------------------- Classifier head ---------------------------
    x = _leaky_relu(
        jnp.dot(joint, w1h_ref[...], preferred_element_type=jnp.float32)
        + b1h_ref[...])                                             # (bt, H)
    y = jnp.dot(x.astype(bf), w2h_ref[...],
                preferred_element_type=jnp.float32) + b2h_ref[...]  # (bt, C_pad)
    out_ref[0] = y


def alfred_fused(f_i, f_e, f_t, params, num_classes):
    """GMF + GatedCrossAttention + head as one pallas_call, grid=(B//B_TILE,)."""
    B, R, H = f_i.shape
    L = f_t.shape[1]
    C_pad = params["fc2_w_pad"].shape[-1]

    b_tile = _choose_b_tile(B, R)
    n_tiles = B // b_tile

    def resident(shape):
        # weights / biases: same block every grid step -> stay resident in VMEM
        return pl.BlockSpec(shape, lambda b, _z=tuple(0 for _ in shape): _z)

    fi_spec = pl.BlockSpec((b_tile, R, H), lambda b: (b, 0, 0))
    fe_spec = pl.BlockSpec((b_tile, R, H), lambda b: (b, 0, 0))
    ft_spec = pl.BlockSpec((b_tile, L, H), lambda b: (b, 0, 0))
    out_spec = pl.BlockSpec((1, b_tile, C_pad), lambda b: (b, 0, 0))

    weight_keys = ("gmf_w12", "gmf_b12", "lrbp_wp12", "lrbp_w", "lrbp_b",
                   "fc1_w", "fc1_b", "fc2_w_pad", "fc2_b_pad")
    act_bytes = sum(int(a.size) * a.dtype.itemsize for a in (f_i, f_e, f_t))
    w_bytes = sum(int(params[k].size) * params[k].dtype.itemsize for k in weight_keys)
    cost = pl.CostEstimate(
        flops=int(B * R * (2 * (2 * H) * (2 * H) * 2 + 2 * H * H)
                  + B * (2 * (2 * H) * H + 2 * H * C_pad)),
        transcendentals=int(3 * B * R * H),            # tanh, tanh, sigmoid
        bytes_accessed=int(act_bytes + w_bytes + B * C_pad * 4),
    )

    out = pl.pallas_call(
        alfred_fused_kernel,
        out_shape=jax.ShapeDtypeStruct((n_tiles, b_tile, C_pad), jnp.float32),
        grid_spec=pltpu.PrefetchScalarGridSpec(
            num_scalar_prefetch=0,
            grid=(n_tiles,),
            in_specs=[
                fi_spec, fe_spec, ft_spec,
                resident((2 * H, 2 * H)), resident((1, 2 * H)),   # packed GMF
                resident((2 * H, 2 * H)),                         # packed LRBP proj1/2
                resident((H, H)), resident((1, H)),               # LRBP proj
                resident((2 * H, H)), resident((1, H)),           # fc1
                resident((H, C_pad)), resident((1, C_pad)),       # fc2 (padded)
            ],
            out_specs=out_spec),
        compiler_params=pltpu.CompilerParams(
            dimension_semantics=("parallel",)),
        cost_estimate=cost,
    )(f_i, f_e, f_t,
      params["gmf_w12"], params["gmf_b12"],
      params["lrbp_wp12"],
      params["lrbp_w"], params["lrbp_b"],
      params["fc1_w"], params["fc1_b"],
      params["fc2_w_pad"], params["fc2_b_pad"])

    return out.reshape(B, C_pad)[:, :num_classes]


# ----------------------------- parameter setup -------------------------------
def init_params(key, H, C, patch_dim, vocab, R):
    ks = jax.random.split(key, 16)

    def w(k, shape, scale=0.02):
        return scale * jax.random.normal(k, shape, dtype=jnp.float32)

    bf = jnp.bfloat16
    C_pad = max(128, ((C + 127) // 128) * 128)

    # Raw per-module weights (mirrors the PyTorch module structure).
    gmf_w1, gmf_b1 = w(ks[0], (H, H)), w(ks[1], (1, H))      # GMF.linear_1
    gmf_w2, gmf_b2 = w(ks[2], (H, H)), w(ks[3], (1, H))      # GMF.linear_2
    lrbp_w1 = w(ks[4], (H, H))                               # LRBP.proj1 (no bias)
    lrbp_w2 = w(ks[5], (H, H))                               # LRBP.proj2 (no bias)
    lrbp_w, lrbp_b = w(ks[6], (H, H)), w(ks[7], (1, H))      # LRBP.proj
    fc1_w, fc1_b = w(ks[8], (2 * H, H)), w(ks[9], (1, H))    # fc1 (2H -> H)
    fc2_w, fc2_b = w(ks[10], (H, C)), jnp.zeros((1, C), jnp.float32)
    # NOTE: gated_cross_attention.{img_linear_1, att_linear_1, text_linear_2,
    # att_linear_2} provably cancel from the forward pass (uniform softmax over
    # a repeated query), so they are never materialized for the kernel.

    # 256-wide MXU packing (fills v6e/v7x 256x256 MXU; v5e runs it as two
    # 128-deep internal passes).
    w12 = jnp.zeros((2 * H, 2 * H), jnp.float32)
    w12 = w12.at[:H, :H].set(gmf_w1).at[H:, H:].set(gmf_w2)          # block-diag
    wp12 = jnp.zeros((2 * H, 2 * H), jnp.float32)
    wp12 = wp12.at[H:, :H].set(lrbp_w1).at[:H, H:].set(lrbp_w2)      # anti-diag
    b12 = jnp.concatenate([gmf_b1, gmf_b2], axis=-1)                 # (1, 2H)
    fc2_w_pad = jnp.zeros((H, C_pad), jnp.float32).at[:, :C].set(fc2_w)
    fc2_b_pad = jnp.zeros((1, C_pad), jnp.float32).at[:, :C].set(fc2_b)

    return {
        # fused-kernel weights (MXU operands stored bf16, biases f32)
        "gmf_w12": w12.astype(bf), "gmf_b12": b12,
        "lrbp_wp12": wp12.astype(bf),
        "lrbp_w": lrbp_w.astype(bf), "lrbp_b": lrbp_b,
        "fc1_w": fc1_w.astype(bf), "fc1_b": fc1_b,
        "fc2_w_pad": fc2_w_pad.astype(bf), "fc2_b_pad": fc2_b_pad,
        # Stand-in encoders (plain JAX, f32)
        "emb_table": w(ks[11], (vocab, H), scale=0.1),
        "patch_w": w(ks[12], (patch_dim, H), scale=0.1),
        "patch_b": w(ks[13], (1, H)),
        "pos_emb": w(ks[14], (R, H)),
    }


# -------------------------------- forward ------------------------------------
def alfred_forward(params, image, f_e, input_ids, attention_mask, *, num_classes):
    B = image.shape[0]

    # TODO(synk): stand-in text encoder (BERT not loadable) -> f_t (B, L, H)
    f_t = params["emb_table"][input_ids] * attention_mask[..., None].astype(jnp.float32)

    # TODO(synk): stand-in visual encoder (ViT not loadable) -> f_i (B, R, H)
    P = 4
    gh, gw = image.shape[2] // P, image.shape[3] // P
    patches = image.reshape(B, 3, gh, P, gw, P).transpose(0, 2, 4, 1, 3, 5)
    patches = patches.reshape(B, gh * gw, 3 * P * P)
    f_i = jnp.tanh(patches @ params["patch_w"] + params["patch_b"] + params["pos_emb"])

    # ALFRED fusion + (closed-form) cross attention + head: one Pallas kernel.
    return alfred_fused(f_i, f_e, f_t, params, num_classes)


if __name__ == "__main__":
    # small shapes: hidden=128, seq=8, regions=16 (4x4 patches of a 16x16 img)
    B, H, L, R, C = 8, 128, 8, 16, 8
    VOCAB = 100

    key = jax.random.PRNGKey(0)
    k_par, k_img, k_fe, k_ids = jax.random.split(key, 4)

    params = init_params(k_par, H=H, C=C, patch_dim=3 * 4 * 4, vocab=VOCAB, R=R)
    image = jax.random.normal(k_img, (B, 3, 16, 16), dtype=jnp.float32)       # NCHW
    f_e = jax.random.normal(k_fe, (B, R, H), dtype=jnp.float32)
    input_ids = jax.random.randint(k_ids, (B, L), 0, VOCAB)
    attention_mask = jnp.ones((B, L), dtype=jnp.int32)

    fwd = jax.jit(functools.partial(alfred_forward, num_classes=C))
    y_hat = fwd(params, image, f_e, input_ids, attention_mask)
    jax.block_until_ready(y_hat)
    assert y_hat.shape == (B, C) and y_hat.dtype == jnp.float32
    print("KERNEL_OK")
</pallas_src>

<mosaic_0001>
module attributes {stable_mosaic.version = 11 : i64} {
  func.func @alfred_fused_kernel(%arg0: i32, %arg1: memref<4x16x128xf32, #tpu.memory_space<vmem>>, %arg2: memref<4x16x128xf32, #tpu.memory_space<vmem>>, %arg3: memref<4x8x128xf32, #tpu.memory_space<vmem>>, %arg4: memref<256x256xbf16, #tpu.memory_space<vmem>>, %arg5: memref<1x256xf32, #tpu.memory_space<vmem>>, %arg6: memref<256x256xbf16, #tpu.memory_space<vmem>>, %arg7: memref<128x128xbf16, #tpu.memory_space<vmem>>, %arg8: memref<1x128xf32, #tpu.memory_space<vmem>>, %arg9: memref<256x128xbf16, #tpu.memory_space<vmem>>, %arg10: memref<1x128xf32, #tpu.memory_space<vmem>>, %arg11: memref<128x128xbf16, #tpu.memory_space<vmem>>, %arg12: memref<1x128xf32, #tpu.memory_space<vmem>>, %arg13: memref<1x4x128xf32, #tpu.memory_space<vmem>>) attributes {dimension_semantics = [#tpu.dimension_semantics<parallel>], iteration_bounds = array<i64: 2>, scalar_prefetch = 0 : i64, scratch_operands = 0 : i64, tpu.core_type = #tpu.core_type<tc>, window_params = [{transform_indices = @transform_0, window_bounds = array<i64: 4, 16, 128>}, {transform_indices = @transform_1, window_bounds = array<i64: 4, 16, 128>}, {transform_indices = @transform_2, window_bounds = array<i64: 4, 8, 128>}, {pipeline_mode = #tpu.pipeline_mode<synchronous>, transform_indices = @transform_3, window_bounds = array<i64: 256, 256>}, {pipeline_mode = #tpu.pipeline_mode<synchronous>, transform_indices = @transform_4, window_bounds = array<i64: 1, 256>}, {pipeline_mode = #tpu.pipeline_mode<synchronous>, transform_indices = @transform_5, window_bounds = array<i64: 256, 256>}, {pipeline_mode = #tpu.pipeline_mode<synchronous>, transform_indices = @transform_6, window_bounds = array<i64: 128, 128>}, {pipeline_mode = #tpu.pipeline_mode<synchronous>, transform_indices = @transform_7, window_bounds = array<i64: 1, 128>}, {pipeline_mode = #tpu.pipeline_mode<synchronous>, transform_indices = @transform_8, window_bounds = array<i64: 256, 128>}, {pipeline_mode = #tpu.pipeline_mode<synchronous>, transform_indices = @transform_9, window_bounds = array<i64: 1, 128>}, {pipeline_mode = #tpu.pipeline_mode<synchronous>, transform_indices = @transform_10, window_bounds = array<i64: 128, 128>}, {pipeline_mode = #tpu.pipeline_mode<synchronous>, transform_indices = @transform_11, window_bounds = array<i64: 1, 128>}, {transform_indices = @transform_12, window_bounds = array<i64: 1, 4, 128>}]} {
    %c0 = arith.constant 0 : index
    %c0_0 = arith.constant 0 : index
    %c0_1 = arith.constant 0 : index
    %0 = vector.load %arg1[%c0, %c0_0, %c0_1] : memref<4x16x128xf32, #tpu.memory_space<vmem>>, vector<4x16x128xf32>
    %1 = vector.shape_cast %0 : vector<4x16x128xf32> to vector<64x128xf32>
    %c0_2 = arith.constant 0 : index
    %c0_3 = arith.constant 0 : index
    %c0_4 = arith.constant 0 : index
    %2 = vector.load %arg2[%c0_2, %c0_3, %c0_4] : memref<4x16x128xf32, #tpu.memory_space<vmem>>, vector<4x16x128xf32>
    %3 = vector.shape_cast %2 : vector<4x16x128xf32> to vector<64x128xf32>
    %4 = tpu.concatenate %3, %1 in 1 : vector<64x128xf32>, vector<64x128xf32> -> vector<64x256xf32>
    %5 = arith.truncf %4 : vector<64x256xf32> to vector<64x256xbf16>
    %c0_5 = arith.constant 0 : index
    %c0_6 = arith.constant 0 : index
    %6 = vector.load %arg4[%c0_5, %c0_6] : memref<256x256xbf16, #tpu.memory_space<vmem>>, vector<256x256xbf16>
    %cst = arith.constant dense<0.000000e+00> : vector<64x256xf32>
    %7 = tpu.matmul %5, %6, %cst {dimension_numbers = #tpu.dot_dimension_numbers<[1], [0], [0], [1], [0, 0, 1, 1], [], []>} : vector<64x256xbf16>, vector<256x256xbf16>, vector<64x256xf32> -> vector<64x256xf32>
    %c0_7 = arith.constant 0 : index
    %c0_8 = arith.constant 0 : index
    %8 = vector.load %arg5[%c0_7, %c0_8] : memref<1x256xf32, #tpu.memory_space<vmem>>, vector<1x256xf32>
    %9 = vector.broadcast %8 : vector<1x256xf32> to vector<64x256xf32>
    %10 = arith.addf %7, %9 : vector<64x256xf32>
    %11 = math.tanh %10 : vector<64x256xf32>
    %12 = vector.extract_strided_slice %11 {offsets = [0, 0], sizes = [64, 128], strides = [1, 1]} : vector<64x256xf32> to vector<64x128xf32>
    %13 = vector.extract_strided_slice %11 {offsets = [0, 128], sizes = [64, 128], strides = [1, 1]} : vector<64x256xf32> to vector<64x128xf32>
    %14 = arith.truncf %11 : vector<64x256xf32> to vector<64x256xbf16>
    %c0_9 = arith.constant 0 : index
    %c0_10 = arith.constant 0 : index
    %15 = vector.load %arg6[%c0_9, %c0_10] : memref<256x256xbf16, #tpu.memory_space<vmem>>, vector<256x256xbf16>
    %cst_11 = arith.constant dense<0.000000e+00> : vector<64x256xf32>
    %16 = tpu.matmul %14, %15, %cst_11 {dimension_numbers = #tpu.dot_dimension_numbers<[1], [0], [0], [1], [0, 0, 1, 1], [], []>} : vector<64x256xbf16>, vector<256x256xbf16>, vector<64x256xf32> -> vector<64x256xf32>
    %cst_12 = arith.constant 0.000000e+00 : f32
    %17 = vector.broadcast %cst_12 : f32 to vector<64x256xf32>
    %18 = arith.cmpf ogt, %16, %17 : vector<64x256xf32>
    %cst_13 = arith.constant 0.00999999977 : f32
    %19 = vector.broadcast %cst_13 : f32 to vector<64x256xf32>
    %20 = arith.mulf %19, %16 : vector<64x256xf32>
    %21 = arith.select %18, %16, %20 : vector<64x256xi1>, vector<64x256xf32>
    %22 = vector.extract_strided_slice %21 {offsets = [0, 0], sizes = [64, 128], strides = [1, 1]} : vector<64x256xf32> to vector<64x128xf32>
    %23 = vector.extract_strided_slice %21 {offsets = [0, 128], sizes = [64, 128], strides = [1, 1]} : vector<64x256xf32> to vector<64x128xf32>
    %24 = arith.mulf %22, %23 : vector<64x128xf32>
    %25 = arith.truncf %24 : vector<64x128xf32> to vector<64x128xbf16>
    %c0_14 = arith.constant 0 : index
    %c0_15 = arith.constant 0 : index
    %26 = vector.load %arg7[%c0_14, %c0_15] : memref<128x128xbf16, #tpu.memory_space<vmem>>, vector<128x128xbf16>
    %cst_16 = arith.constant dense<0.000000e+00> : vector<64x128xf32>
    %27 = tpu.matmul %25, %26, %cst_16 {dimension_numbers = #tpu.dot_dimension_numbers<[1], [0], [0], [1], [0, 0, 1, 1], [], []>} : vector<64x128xbf16>, vector<128x128xbf16>, vector<64x128xf32> -> vector<64x128xf32>
    %c0_17 = arith.constant 0 : index
    %c0_18 = arith.constant 0 : index
    %28 = vector.load %arg8[%c0_17, %c0_18] : memref<1x128xf32, #tpu.memory_space<vmem>>, vector<1x128xf32>
    %29 = vector.broadcast %28 : vector<1x128xf32> to vector<64x128xf32>
    %30 = arith.addf %27, %29 : vector<64x128xf32>
    %31 = arith.negf %30 : vector<64x128xf32>
    %32 = math.exp %31 : vector<64x128xf32>
    %cst_19 = arith.constant 1.000000e+00 : f32
    %33 = vector.broadcast %cst_19 : f32 to vector<64x128xf32>
    %34 = arith.addf %33, %32 : vector<64x128xf32>
    %35 = arith.divf %33, %34 : vector<64x128xf32>
    %36 = arith.mulf %35, %12 : vector<64x128xf32>
    %cst_20 = arith.constant 1.000000e+00 : f32
    %37 = vector.broadcast %cst_20 : f32 to vector<64x128xf32>
    %38 = arith.subf %37, %35 : vector<64x128xf32>
    %39 = arith.mulf %38, %13 : vector<64x128xf32>
    %40 = arith.addf %36, %39 : vector<64x128xf32>
    %c0_21 = arith.constant 0 : index
    %c0_22 = arith.constant 0 : index
    %c0_23 = arith.constant 0 : index
    %41 = vector.load %arg3[%c0_21, %c0_22, %c0_23] : memref<4x8x128xf32, #tpu.memory_space<vmem>>, vector<4x8x128xf32>
    %cst_24 = arith.constant dense<0.000000e+00> : vector<4x128xf32>
    %42 = vector.multi_reduction <add>, %41, %cst_24 [1] : vector<4x8x128xf32> to vector<4x128xf32>
    %cst_25 = arith.constant 2.000000e+00 : f32
    %43 = vector.broadcast %cst_25 : f32 to vector<4x128xf32>
    %44 = arith.mulf %42, %43 : vector<4x128xf32>
    %45 = vector.shape_cast %40 : vector<64x128xf32> to vector<4x16x128xf32>
    %cst_26 = arith.constant dense<0.000000e+00> : vector<4x128xf32>
    %46 = vector.multi_reduction <add>, %45, %cst_26 [1] : vector<4x16x128xf32> to vector<4x128xf32>
    %47 = tpu.concatenate %44, %46 in 1 : vector<4x128xf32>, vector<4x128xf32> -> vector<4x256xf32>
    %48 = arith.truncf %47 : vector<4x256xf32> to vector<4x256xbf16>
    %c0_27 = arith.constant 0 : index
    %c0_28 = arith.constant 0 : index
    %49 = vector.load %arg9[%c0_27, %c0_28] : memref<256x128xbf16, #tpu.memory_space<vmem>>, vector<256x128xbf16>
    %cst_29 = arith.constant dense<0.000000e+00> : vector<4x128xf32>
    %50 = tpu.matmul %48, %49, %cst_29 {dimension_numbers = #tpu.dot_dimension_numbers<[1], [0], [0], [1], [0, 0, 1, 1], [], []>} : vector<4x256xbf16>, vector<256x128xbf16>, vector<4x128xf32> -> vector<4x128xf32>
    %c0_30 = arith.constant 0 : index
    %c0_31 = arith.constant 0 : index
    %51 = vector.load %arg10[%c0_30, %c0_31] : memref<1x128xf32, #tpu.memory_space<vmem>>, vector<1x128xf32>
    %52 = vector.broadcast %51 : vector<1x128xf32> to vector<4x128xf32>
    %53 = arith.addf %50, %52 : vector<4x128xf32>
    %cst_32 = arith.constant 0.000000e+00 : f32
    %54 = vector.broadcast %cst_32 : f32 to vector<4x128xf32>
    %55 = arith.cmpf ogt, %53, %54 : vector<4x128xf32>
    %cst_33 = arith.constant 0.00999999977 : f32
    %56 = vector.broadcast %cst_33 : f32 to vector<4x128xf32>
    %57 = arith.mulf %56, %53 : vector<4x128xf32>
    %58 = arith.select %55, %53, %57 : vector<4x128xi1>, vector<4x128xf32>
    %59 = arith.truncf %58 : vector<4x128xf32> to vector<4x128xbf16>
    %c0_34 = arith.constant 0 : index
    %c0_35 = arith.constant 0 : index
    %60 = vector.load %arg11[%c0_34, %c0_35] : memref<128x128xbf16, #tpu.memory_space<vmem>>, vector<128x128xbf16>
    %cst_36 = arith.constant dense<0.000000e+00> : vector<4x128xf32>
    %61 = tpu.matmul %59, %60, %cst_36 {dimension_numbers = #tpu.dot_dimension_numbers<[1], [0], [0], [1], [0, 0, 1, 1], [], []>} : vector<4x128xbf16>, vector<128x128xbf16>, vector<4x128xf32> -> vector<4x128xf32>
    %c0_37 = arith.constant 0 : index
    %c0_38 = arith.constant 0 : index
    %62 = vector.load %arg12[%c0_37, %c0_38] : memref<1x128xf32, #tpu.memory_space<vmem>>, vector<1x128xf32>
    %63 = vector.broadcast %62 : vector<1x128xf32> to vector<4x128xf32>
    %64 = arith.addf %61, %63 : vector<4x128xf32>
    %c0_39 = arith.constant 0 : index
    %c0_40 = arith.constant 0 : index
    %c0_41 = arith.constant 0 : index
    %65 = vector.load %arg13[%c0_39, %c0_40, %c0_41] : memref<1x4x128xf32, #tpu.memory_space<vmem>>, vector<1x4x128xf32>
    %66 = vector.shape_cast %65 : vector<1x4x128xf32> to vector<4x128xf32>
    %67 = vector.shape_cast %64 : vector<4x128xf32> to vector<1x4x128xf32>
    tpu.vector_store %arg13[%c0_39, %c0_40, %c0_41], %67 {strides = array<i32>} : memref<1x4x128xf32, #tpu.memory_space<vmem>>, vector<1x4x128xf32>,
    return
  }
  func.func @transform_0(%arg0: i32) -> (i32, i32, i32) {
    %c0_i32 = arith.constant 0 : i32
    %c0_i32_0 = arith.constant 0 : i32
    %c0_i32_1 = arith.constant 0 : i32
    return %arg0, %c0_i32, %c0_i32_0 : i32, i32, i32
  }
  func.func @transform_1(%arg0: i32) -> (i32, i32, i32) {
    %c0_i32 = arith.constant 0 : i32
    %c0_i32_0 = arith.constant 0 : i32
    %c0_i32_1 = arith.constant 0 : i32
    return %arg0, %c0_i32, %c0_i32_0 : i32, i32, i32
  }
  func.func @transform_2(%arg0: i32) -> (i32, i32, i32) {
    %c0_i32 = arith.constant 0 : i32
    %c0_i32_0 = arith.constant 0 : i32
    %c0_i32_1 = arith.constant 0 : i32
    return %arg0, %c0_i32, %c0_i32_0 : i32, i32, i32
  }
  func.func @transform_3(%arg0: i32) -> (i32, i32) {
    %c0_i32 = arith.constant 0 : i32
    %c0_i32_0 = arith.constant 0 : i32
    %c0_i32_1 = arith.constant 0 : i32
    return %c0_i32, %c0_i32_0 : i32, i32
  }
  func.func @transform_4(%arg0: i32) -> (i32, i32) {
    %c0_i32 = arith.constant 0 : i32
    %c0_i32_0 = arith.constant 0 : i32
    %c0_i32_1 = arith.constant 0 : i32
    return %c0_i32, %c0_i32_0 : i32, i32
  }
  func.func @transform_5(%arg0: i32) -> (i32, i32) {
    %c0_i32 = arith.constant 0 : i32
    %c0_i32_0 = arith.constant 0 : i32
    %c0_i32_1 = arith.constant 0 : i32
    return %c0_i32, %c0_i32_0 : i32, i32
  }
  func.func @transform_6(%arg0: i32) -> (i32, i32) {
    %c0_i32 = arith.constant 0 : i32
    %c0_i32_0 = arith.constant 0 : i32
    %c0_i32_1 = arith.constant 0 : i32
    return %c0_i32, %c0_i32_0 : i32, i32
  }
  func.func @transform_7(%arg0: i32) -> (i32, i32) {
    %c0_i32 = arith.constant 0 : i32
    %c0_i32_0 = arith.constant 0 : i32
    %c0_i32_1 = arith.constant 0 : i32
    return %c0_i32, %c0_i32_0 : i32, i32
  }
  func.func @transform_8(%arg0: i32) -> (i32, i32) {
    %c0_i32 = arith.constant 0 : i32
    %c0_i32_0 = arith.constant 0 : i32
    %c0_i32_1 = arith.constant 0 : i32
    return %c0_i32, %c0_i32_0 : i32, i32
  }
  func.func @transform_9(%arg0: i32) -> (i32, i32) {
    %c0_i32 = arith.constant 0 : i32
    %c0_i32_0 = arith.constant 0 : i32
    %c0_i32_1 = arith.constant 0 : i32
    return %c0_i32, %c0_i32_0 : i32, i32
  }
  func.func @transform_10(%arg0: i32) -> (i32, i32) {
    %c0_i32 = arith.constant 0 : i32
    %c0_i32_0 = arith.constant 0 : i32
    %c0_i32_1 = arith.constant 0 : i32
    return %c0_i32, %c0_i32_0 : i32, i32
  }
  func.func @transform_11(%arg0: i32) -> (i32, i32) {
    %c0_i32 = arith.constant 0 : i32
    %c0_i32_0 = arith.constant 0 : i32
    %c0_i32_1 = arith.constant 0 : i32
    return %c0_i32, %c0_i32_0 : i32, i32
  }
  func.func @transform_12(%arg0: i32) -> (i32, i32, i32) {
    %c0_i32 = arith.constant 0 : i32
    %c0_i32_0 = arith.constant 0 : i32
    %c0_i32_1 = arith.constant 0 : i32
    return %arg0, %c0_i32, %c0_i32_0 : i32, i32, i32
  }
}

</mosaic_0001>

<bundles_post_ra>
// kernel: alfred_forward.1
= control target key start
LH: loop header
LB: loop body
LE: loop exit
PB: predicated region body
PF: predicated region fallthrough
CT: control target
= control target key end

     0   :  { %17 = vsyncpa [#allocation3], 0  ;;  %s3517_s0 = inlined_call_operand.vmem [shape: f32[8,16,128], index: 0, kind: input, shape index: {}]   ;;  %s3518_s1 = inlined_call_operand.vmem [shape: f32[8,16,128], index: 1, kind: input, shape index: {}]   ;;  %s3519_s2 = inlined_call_operand.vmem [shape: f32[8,8,128], index: 2, kind: input, shape index: {}]   ;;  %s3520_s3 = inlined_call_operand.vmem [shape: bf16[256,256], index: 3, kind: input, shape index: {}]   ;;  %s3521_s4 = inlined_call_operand.vmem [shape: f32[1,256], index: 4, kind: input, shape index: {}]   ;;  %s3522_s5 = inlined_call_operand.vmem [shape: bf16[256,256], index: 5, kind: input, shape index: {}]   ;;  %s3523_s6 = inlined_call_operand.vmem [shape: bf16[128,128], index: 6, kind: input, shape index: {}]   ;;  %s3524_s7 = inlined_call_operand.vmem [shape: f32[1,128], index: 7, kind: input, shape index: {}]   ;;  %s3525_s8 = inlined_call_operand.vmem [shape: bf16[256,128], index: 8, kind: input, shape index: {}]   ;;  %s3526_s9 = inlined_call_operand.vmem [shape: f32[1,128], index: 9, kind: input, shape index: {}]   ;;  %s3527_s10 = inlined_call_operand.vmem [shape: bf16[128,128], index: 10, kind: input, shape index: {}]   ;;  %s3528_s11 = inlined_call_operand.vmem [shape: f32[1,128], index: 11, kind: input, shape index: {}]   ;;  %s3529_s12 = inlined_call_operand.hbm [shape: f32[2,4,128], index: 12, kind: output, shape index: {}]  }
   0x1   :  { %19 = vsyncpa [#allocation3 + $0x1], 0  ;;  %s2649_s21 = smov 0   ;;  %s2651_s22 = smov 0  }
   0x2   :  { %s2653_s23 = smov 0   ;;  %s2655_s24 = smov 0  }
   0x3 LB: > { %3535 = sst [smem:[#allocation5_spill]] %s2578_s23  ;;  %s3530_s25 = sadd.s32 4294967295, %s2582_s24   ;;  %s2582_s24 = sphi %s2655_s24, %s3559_s24   ;;  %s2578_s23 = sphi %s2653_s23, %s3561_s23   ;;  %s2574_s22 = sphi %s2651_s22, %s3563_s22   ;;  %s2570_s21 = sphi %s2649_s21, %s3562_s21  }
   0x4   : > { %s1899_s26 = sadd.s32 4294967294, %s2582_s24   ;;  %s2672_s27 = sadd.s32 1, %s2582_s24  }
   0x5   : > { %3536 = sst [smem:[#allocation6_spill]] %s2672_s27  ;;  %s299_s28 = sadd.s32 1, %s2578_s23 }
   0x6   : > { %s296_s29 = ssub.s32 %s2582_s24, %s2672_s27  ;;  %p309_p0 = scmp.ne.s32.totalorder %s2578_s23, %s2574_s22 }
   0x7   : > { %p297_p1 = scmp.eq.s32.totalorder %s296_s29, 0  ;;  %p310_p2 = scmp.eq.s32.totalorder %s3530_s25, 1 }
   0x8   : > { %p315_p3 = scmp.ne.s32.totalorder %s2574_s22, %s2570_s21  ;;  %p316_p4 = scmp.eq.s32.totalorder %s1899_s26, 1 }
   0x9   : > { %s2684_s30 = scalar_select %p297_p1, %s2578_s23, %s299_s28  }
   0xa   : > { %p2686_p5 = por %p310_p2, %p309_p0  ;;  %p2690_p6 = por %p316_p4, %p315_p3 }
   0xb   : > { %3537 = sst [smem:[#allocation7_spill]] %s2684_s30  ;;  %p1902_p7 = scmp.ge.s32.totalorder %s2582_s24, 1 }
   0xc   : > { %s3539_s14 = scalar_select %p2690_p6, 1, 0 }
   0xd   : > { %p390_p8 = scmp.lt.s32.totalorder %s2582_s24, 3 }
   0xe   : > { %3540 = sst [smem:[#allocation8_spill]] %s3539_s14 }
   0xf   : > { %p391_p9 = pnand %p1902_p7, %p390_p8 }
  0x10   : > { %s3541_s28 = sadd.s32 (!%p391_p9), 4294967295, %s2582_s24  }
  0x11   : > { %394 = sbr.rel (%p391_p9) target bundleno = 896 (0x380), region = 68  ;;  %s2776_s30 = sshll.u32 (!%p391_p9), %s3541_s28, 2 }
  0x12   : > { %p445_p10 = scmp.lt.s32.totalorder (!%p391_p9), %s2776_s30, 7  ;;  %s1811_s28 = scalar_lea.hbm (!%p391_p9), %s3529_s12, %s2776_s30 }
  0x16   : > { %v1970_v0 = vld [vmem:[%s3520_s3 + $0x70] sm:$0xf]  ;;  %v2325_v1 = vld [vmem:[%s3520_s3 + $0x74] sm:$0xf0]  ;;  %v1962_v2 = vld [vmem:[%s3520_s3 + $0x60] sm:$0xf] }
  0x17   : > { %v1971_v3 = vor.u32 %v2325_v1, %v1970_v0  ;;  %v2323_v4 = vld [vmem:[%s3520_s3 + $0x64] sm:$0xf0]  ;;  %v2324_v5 = vld [vmem:[%s3520_s3 + $0x74] sm:$0xf]  ;;  %v1972_v6 = vld [vmem:[%s3520_s3 + $0x78] sm:$0xf0] }
  0x18   : > { %v2340_v7 = vld [vmem:[%s3520_s3 + $0xf4] sm:$0xf]  ;;  %v1963_v8 = vor.u32 %v2323_v4, %v1962_v2  ;;  %v1954_v9 = vld [vmem:[%s3520_s3 + $0x50] sm:$0xf]  ;;  %v2321_v10 = vld [vmem:[%s3520_s3 + $0x54] sm:$0xf0]  ;;  %v1975_v11 = vor.u32 %v2324_v5, %v1972_v6 }
  0x19   : > { %2406 = vmatpush.bf16.msra.mxu1 %v1971_v3  ;;  %v2036_v12 = vld [vmem:[%s3520_s3 + $0xf8] sm:$0xf0]  ;;  %686 = vmatpush.bf16.msra.mxu0 %v1971_v3  ;;  %v2322_v14 = vld [vmem:[%s3520_s3 + $0x64] sm:$0xf]  ;;  %v1964_v15 = vld [vmem:[%s3520_s3 + $0x68] sm:$0xf0]  ;;  %v1955_v22 = vor.u32 %v2321_v10, %v1954_v9 }
  0x1a   : > { %v2039_v13 = vor.u32 %v2340_v7, %v2036_v12  ;;  %v2338_v16 = vld [vmem:[%s3520_s3 + $0xe4] sm:$0xf]  ;;  %744 = vmatpush.bf16.msra.mxu2 %v1975_v11  ;;  %v1967_v17 = vor.u32 %v2322_v14, %v1964_v15  ;;  %v2028_v18 = vld [vmem:[%s3520_s3 + $0xe8] sm:$0xf0]  ;;  %v2320_v20 = vld [vmem:[%s3520_s3 + $0x54] sm:$0xf] }
  0x1b   : > { %v2031_v19 = vor.u32 %v2338_v16, %v2028_v18  ;;  %v1956_v21 = vld [vmem:[%s3520_s3 + $0x58] sm:$0xf0]  ;;  %v2336_v23 = vld [vmem:[%s3520_s3 + $0xd4] sm:$0xf]  ;;  %v1946_v25 = vld [vmem:[%s3520_s3 + $0x40] sm:$0xf] }
  0x1c   : > { %773 = vmatpush.bf16.msra.mxu3 %v2039_v13  ;;  %v2020_v24 = vld [vmem:[%s3520_s3 + $0xd8] sm:$0xf0]  ;;  %v2319_v26 = vld [vmem:[%s3520_s3 + $0x44] sm:$0xf0]  ;;  %v1959_v27 = vor.u32 %v2320_v20, %v1956_v21  ;;  %v2318_v29 = vld [vmem:[%s3520_s3 + $0x44] sm:$0xf] }
  0x1d   : > { %2407 = vmatpush.bf16.msra.mxu1 %v1963_v8  ;;  %687 = vmatpush.bf16.msra.mxu0 %v1963_v8  ;;  %v2023_v28 = vor.u32 %v2336_v23, %v2020_v24  ;;  %v1948_v30 = vld [vmem:[%s3520_s3 + $0x48] sm:$0xf0]  ;;  %v1947_v31 = vor.u32 %v2319_v26, %v1946_v25  ;;  %v2334_v32 = vld [vmem:[%s3520_s3 + $0xc4] sm:$0xf]  ;;  %v1938_v34 = vld [vmem:[%s3520_s3 + $0x30] sm:$0xf] }
  0x1e   : > { %745 = vmatpush.bf16.msra.mxu2 %v1967_v17  ;;  %v2012_v33 = vld [vmem:[%s3520_s3 + $0xc8] sm:$0xf0]  ;;  %v2317_v35 = vld [vmem:[%s3520_s3 + $0x34] sm:$0xf0]  ;;  %v1951_v36 = vor.u32 %v2318_v29, %v1948_v30  ;;  %v2316_v38 = vld [vmem:[%s3520_s3 + $0x34] sm:$0xf] }
  0x1f   : > { %v2015_v37 = vor.u32 %v2334_v32, %v2012_v33  ;;  %v1940_v39 = vld [vmem:[%s3520_s3 + $0x38] sm:$0xf0]  ;;  %v1939_v40 = vor.u32 %v2317_v35, %v1938_v34  ;;  %v2332_v41 = vld [vmem:[%s3520_s3 + $0xb4] sm:$0xf]  ;;  %v1930_v43 = vld [vmem:[%s3520_s3 + $0x20] sm:$0xf] }
  0x20   : > { %774 = vmatpush.bf16.msra.mxu3 %v2031_v19  ;;  %v2004_v42 = vld [vmem:[%s3520_s3 + $0xb8] sm:$0xf0]  ;;  %v2315_v44 = vld [vmem:[%s3520_s3 + $0x24] sm:$0xf0]  ;;  %s2798_s16 = scalar_select %p445_p10, %s2776_s30, 7  ;;  %v1943_v45 = vor.u32 %v2316_v38, %v1940_v39 }
  0x21   : > { %2408 = vmatpush.bf16.msra.mxu1 %v1955_v22  ;;  %688 = vmatpush.bf16.msra.mxu0 %v1955_v22  ;;  %v2007_v46 = vor.u32 %v2332_v41, %v2004_v42  ;;  %v2314_v47 = vld [vmem:[%s3520_s3 + $0x24] sm:$0xf]  ;;  %v1932_v48 = vld [vmem:[%s3520_s3 + $0x28] sm:$0xf0]  ;;  %v1931_v49 = vor.u32 %v2315_v44, %v1930_v43  ;;  %v1922_v52 = vld [vmem:[%s3520_s3 + $0x10] sm:$0xf] }
  0x22   : > { %746 = vmatpush.bf16.msra.mxu2 %v1959_v27  ;;  %v2330_v50 = vld [vmem:[%s3520_s3 + $0xa4] sm:$0xf]  ;;  %v1996_v51 = vld [vmem:[%s3520_s3 + $0xa8] sm:$0xf0]  ;;  %v2313_v53 = vld [vmem:[%s3520_s3 + $0x14] sm:$0xf0]  ;;  %v1935_v54 = vor.u32 %v2314_v47, %v1932_v48 }
  0x23   : > { %s2308_s19 = sshll.u32 %s2798_s16, 4  ;;  %v1999_v55 = vor.u32 %v2330_v50, %v1996_v51  ;;  %v2312_v56 = vld [vmem:[%s3520_s3 + $0x14] sm:$0xf]  ;;  %v1924_v57 = vld [vmem:[%s3520_s3 + $0x18] sm:$0xf0]  ;;  %v1923_v58 = vor.u32 %v2313_v53, %v1922_v52  ;;  %s1911_s29 = sshll.u32 %s2798_s16, 3 }
  0x24   : > { %775 = vmatpush.bf16.msra.mxu3 %v2023_v28  ;;  %v1914_v59 = vld [vmem:[%s3520_s3] sm:$0xf]  ;;  %s2833_s18 = scalar_lea.vmem %s3518_s1, %s2308_s19  ;;  %v2328_v60 = vld [vmem:[%s3520_s3 + $0x94] sm:$0xf]  ;;  %v1988_v61 = vld [vmem:[%s3520_s3 + $0x98] sm:$0xf0]  ;;  %v1927_v1 = vor.u32 %v2312_v56, %v1924_v57  ;;  %s2869_s27 = scalar_lea.vmem %s3517_s0, %s2308_s19 }
  0x25   : > { %2409 = vmatpush.bf16.msra.mxu1 %v1947_v31  ;;  %689 = vmatpush.bf16.msra.mxu0 %v1947_v31  ;;  %v2311_v62 = vld [vmem:[%s3520_s3 + $0x4] sm:$0xf0]  ;;  %v2034_v63 = vld [vmem:[%s3520_s3 + $0xf0] sm:$0xf]  ;;  %v2341_v0 = vld [vmem:[%s3520_s3 + $0xf4] sm:$0xf0]  ;;  %v1991_v6 = vor.u32 %v2328_v60, %v1988_v61  ;;  %s3303_s20 = scalar_lea.vmem %s3519_s2, %s1911_s29 }
  0x26   : > { %747 = vmatpush.bf16.msra.mxu2 %v1951_v36  ;;  %v2310_v2 = vld [vmem:[%s3520_s3 + $0x4] sm:$0xf]  ;;  %v1916_v3 = vld [vmem:[%s3520_s3 + $0x8] sm:$0xf0]  ;;  %v1915_v8 = vor.u32 %v2311_v62, %v1914_v59  ;;  %v2035_v10 = vor.u32 %v2341_v0, %v2034_v63  ;;  %v2026_v11 = vld [vmem:[%s3520_s3 + $0xe0] sm:$0xf] }
  0x27   : > { %v2326_v4 = vld [vmem:[%s3520_s3 + $0x84] sm:$0xf]  ;;  %v1980_v7 = vld [vmem:[%s3520_s3 + $0x88] sm:$0xf0]  ;;  %v2339_v12 = vld [vmem:[%s3520_s3 + $0xe4] sm:$0xf0]  ;;  %v1919_v13 = vor.u32 %v2310_v2, %v1916_v3 }
  0x28   : > { %776 = vmatpush.bf16.msra.mxu3 %v2015_v37  ;;  %v476_v5 = vld [vmem:[%s2833_s18 + $0x20] sm:$0xff]  ;;  %v477_v9 = vld [vmem:[%s2833_s18 + $0x28] sm:$0xff]  ;;  %v1983_v17 = vor.u32 %v2326_v4, %v1980_v7  ;;  %v2027_v20 = vor.u32 %v2339_v12, %v2026_v11  ;;  %v2018_v22 = vld [vmem:[%s3520_s3 + $0xd0] sm:$0xf]  ;;  %s1815_s16 = sshll.u32 %s1811_s28, 4  ;;  %s2540_s19 = scalar_lea.hbm %s3529_s12, 8  ;;  %s1816_s16 = int_to_ptr.hbm [resolvable:$true] %s1815_s16 }
  0x29   : > { %2410 = vmatpush.bf16.msra.mxu1 %v1939_v40  ;;  %690 = vmatpush.bf16.msra.mxu0 %v1939_v40  ;;  %v472_v14 = vld [vmem:[%s2833_s18] sm:$0xff]  ;;  %v473_v15 = vld [vmem:[%s2833_s18 + $0x8] sm:$0xff]  ;;  %v484_v16 = vpack.c.bf16 %v477_v9, %v476_v5  ;;  %v2337_v23 = vld [vmem:[%s3520_s3 + $0xd4] sm:$0xf0]  ;;  %s2534_s26 = sshra.s32 %s1816_s16, 4  ;;  %s2535_s26 = int_to_ptr.hbm [resolvable:$true] %s2534_s26 }
  0x2a   : > { %748 = vmatpush.bf16.msra.mxu2 %v1943_v45  ;;  %v464_v18 = vld [vmem:[%s2869_s27] sm:$0xff]  ;;  %v465_v19 = vld [vmem:[%s2869_s27 + $0x8] sm:$0xff]  ;;  %v480_v21 = vpack.c.bf16 %v473_v15, %v472_v14  ;;  %v2019_v25 = vor.u32 %v2337_v23, %v2018_v22  ;;  %v2002_v29 = vld [vmem:[%s3520_s3 + $0xb0] sm:$0xf]  ;;  %s2536_s25 = scalar_lea.hbm %s2535_s26, 4  ;;  %p2541_p0 = scmp.lt.s32.totalorder %s2535_s26, %s3529_s12 }
  0x2b   : > { %v481_v24 = vpack.c.bf16 %v465_v19, %v464_v18  ;;  %v2010_v26 = vld [vmem:[%s3520_s3 + $0xc0] sm:$0xf]  ;;  %v2335_v27 = vld [vmem:[%s3520_s3 + $0xc4] sm:$0xf0]  ;;  %v2333_v30 = vld [vmem:[%s3520_s3 + $0xb4] sm:$0xf0]  ;;  %p2537_p11 = scmp.ne.s32.totalorder %s2535_s26, %s2536_s25  ;;  %p2542_p1 = scmp.lt.s32.totalorder %s2540_s19, %s2536_s25 }
  0x2c   : > { %777 = vmatpush.bf16.msra.mxu3 %v2007_v46  ;;  %v2011_v28 = vor.u32 %v2335_v27, %v2010_v26  ;;  %v478_v31 = vld [vmem:[%s2833_s18 + $0x30] sm:$0xff]  ;;  %v479_v32 = vld [vmem:[%s2833_s18 + $0x38] sm:$0xff]  ;;  %v2003_v33 = vor.u32 %v2333_v30, %v2002_v29  ;;  %v1994_v34 = vld [vmem:[%s3520_s3 + $0xa0] sm:$0xf] }
  0x2d   : > { %2411 = vmatpush.bf16.msra.mxu1 %v1931_v49  ;;  %691 = vmatpush.bf16.msra.mxu0 %v1931_v49  ;;  %v2331_v35 = vld [vmem:[%s3520_s3 + $0xa4] sm:$0xf0]  ;;  %v474_v36 = vld [vmem:[%s2833_s18 + $0x10] sm:$0xff]  ;;  %v475_v37 = vld [vmem:[%s2833_s18 + $0x18] sm:$0xff]  ;;  %v486_v38 = vpack.c.bf16 %v479_v32, %v478_v31  ;;  %s441_s18 = sand.u32 1, %s2574_s22   ;;  %p2538_p12 = pnand %p2537_p11, %p2686_p5 }
  0x2e   : > { %749 = vmatpush.bf16.msra.mxu2 %v1935_v54  ;;  %v466_v39 = vld [vmem:[%s2869_s27 + $0x10] sm:$0xff]  ;;  %v467_v40 = vld [vmem:[%s2869_s27 + $0x18] sm:$0xff]  ;;  %v1995_v41 = vor.u32 %v2331_v35, %v1994_v34  ;;  %v482_v42 = vpack.c.bf16 %v475_v37, %v474_v36  ;;  %v1978_v47 = vld [vmem:[%s3520_s3 + $0x80] sm:$0xf]  ;;  %s1801_s14 = scalar_lea.sflag [#allocation3], %s441_s18  ;;  %p2543_p2 = por %p2542_p1, %p2541_p0 }
  0x2f   : > { %v1986_v43 = vld [vmem:[%s3520_s3 + $0x90] sm:$0xf]  ;;  %v2329_v44 = vld [vmem:[%s3520_s3 + $0x94] sm:$0xf0]  ;;  %v483_v45 = vpack.c.bf16 %v467_v40, %v466_v39  ;;  %v2327_v48 = vld [vmem:[%s3520_s3 + $0x84] sm:$0xf0]  ;;  %p2539_p13 = pneg %p2538_p12 }
  0x30   : > { %778 = vmatpush.bf16.msra.mxu3 %v1999_v55  ;;  %v1987_v46 = vor.u32 %v2329_v44, %v1986_v43  ;;  %v1979_v49 = vor.u32 %v2327_v48, %v1978_v47  ;;  %v468_v50 = vld [vmem:[%s2869_s27 + $0x20] sm:$0xff]  ;;  %v469_v51 = vld [vmem:[%s2869_s27 + $0x28] sm:$0xff]  ;;  %v470_v53 = vld [vmem:[%s2869_s27 + $0x30] sm:$0xff] }
  0x31   : > { %2412 = vmatpush.bf16.msra.mxu1 %v1923_v58  ;;  %692 = vmatpush.bf16.msra.mxu0 %v1923_v58  ;;  %v485_v52 = vpack.c.bf16 %v469_v51, %v468_v50  ;;  %v471_v54 = vld [vmem:[%s2869_s27 + $0x38] sm:$0xff]  ;;  %v2356_v56 = vld [vmem:[%s3522_s5 + $0x74] sm:$0xf]  ;;  %v2162_v61 = vld [vmem:[%s3522_s5 + $0xf0] sm:$0xf]  ;;  %s1903_s27 = sshll.u32 %s441_s18, 2  ;;  %p2544_p3 = pnand %p2543_p2, %p2539_p13 }
  0x32   : > { %750 = vmatpush.bf16.msra.mxu2 %v1927_v1  ;;  %v487_v55 = vpack.c.bf16 %v471_v54, %v470_v53  ;;  %v2100_v57 = vld [vmem:[%s3522_s5 + $0x78] sm:$0xf0]  ;;  %v2372_v58 = vld [vmem:[%s3522_s5 + $0xf4] sm:$0xf]  ;;  %v2373_v62 = vld [vmem:[%s3522_s5 + $0xf4] sm:$0xf0] }
  0x33   : > { %v2103_v59 = vor.u32 %v2356_v56, %v2100_v57  ;;  %v2164_v60 = vld [vmem:[%s3522_s5 + $0xf8] sm:$0xf0]  ;;  %v2163_v0 = vor.u32 %v2373_v62, %v2162_v61  ;;  %v2354_v1 = vld [vmem:[%s3522_s5 + $0x64] sm:$0xf]  ;;  %v2092_v2 = vld [vmem:[%s3522_s5 + $0x68] sm:$0xf0] }
  0x34   : > { %779 = vmatpush.bf16.msra.mxu3 %v1991_v6  ;;  %v2167_v63 = vor.u32 %v2372_v58, %v2164_v60  ;;  %v2370_v3 = vld [vmem:[%s3522_s5 + $0xe4] sm:$0xf]  ;;  %v2095_v4 = vor.u32 %v2354_v1, %v2092_v2  ;;  %v2156_v5 = vld [vmem:[%s3522_s5 + $0xe8] sm:$0xf0]  ;;  %v2154_v7 = vld [vmem:[%s3522_s5 + $0xe0] sm:$0xf] }
  0x35   : > { %2413 = vmatpush.bf16.msra.mxu1 %v1915_v8  ;;  %693 = vmatpush.bf16.msra.mxu0 %v1915_v8  ;;  %v2159_v6 = vor.u32 %v2370_v3, %v2156_v5  ;;  %v2371_v8 = vld [vmem:[%s3522_s5 + $0xe4] sm:$0xf0]  ;;  %v2352_v9 = vld [vmem:[%s3522_s5 + $0x54] sm:$0xf]  ;;  %v2084_v11 = vld [vmem:[%s3522_s5 + $0x58] sm:$0xf0] }
  0x36   : > { %751 = vmatpush.bf16.msra.mxu2 %v1919_v13  ;;  %v2368_v12 = vld [vmem:[%s3522_s5 + $0xd4] sm:$0xf]  ;;  %v2148_v13 = vld [vmem:[%s3522_s5 + $0xd8] sm:$0xf0]  ;;  %v2087_v14 = vor.u32 %v2352_v9, %v2084_v11  ;;  %v2350_v18 = vld [vmem:[%s3522_s5 + $0x44] sm:$0xf] }
  0x37   : > { %v2151_v15 = vor.u32 %v2368_v12, %v2148_v13  ;;  %v2140_v22 = vld [vmem:[%s3522_s5 + $0xc8] sm:$0xf0]  ;;  %v2367_v26 = vld [vmem:[%s3522_s5 + $0xc4] sm:$0xf0]  ;;  %v2068_v29 = vld [vmem:[%s3522_s5 + $0x38] sm:$0xf0] }
  0x38   : > { %704 = vmatmul.bf16.vlgmr.msra.gmra.mxu1 %v484_v16  ;;  %780 = vmatpush.bf16.msra.mxu3 %v1983_v17  ;;  %v2369_v17 = vld [vmem:[%s3522_s5 + $0xd4] sm:$0xf0]  ;;  %v2364_v30 = vld [vmem:[%s3522_s5 + $0xb4] sm:$0xf]  ;;  %v2132_v32 = vld [vmem:[%s3522_s5 + $0xb8] sm:$0xf0] }
  0x39   : > { %715 = vmatpush.bf16.msrb.mxu1 %v2035_v10  ;;  %694 = vmatmul.bf16.vlgmr.msra.gmra.mxu0 %v480_v21  ;;  %v2155_v10 = vor.u32 %v2371_v8, %v2154_v7  ;;  %v2357_v34 = vld [vmem:[%s3522_s5 + $0x74] sm:$0xf0]  ;;  %v2135_v35 = vor.u32 %v2364_v30, %v2132_v32  ;;  %v2130_v37 = vld [vmem:[%s3522_s5 + $0xb0] sm:$0xf]  ;;  %v2090_v40 = vld [vmem:[%s3522_s5 + $0x60] sm:$0xf] }
  0x3a   : > { %752 = vmatmul.bf16.vlgmr.msra.gmra.mxu2 %v480_v21  ;;  %v2366_v21 = vld [vmem:[%s3522_s5 + $0xc4] sm:$0xf]  ;;  %v2363_v44 = vld [vmem:[%s3522_s5 + $0xa4] sm:$0xf0]  ;;  %v2060_v50 = vld [vmem:[%s3522_s5 + $0x28] sm:$0xf0] }
  0x3b   : > { %781 = vmatmul.bf16.vlgmr.msra.gmra.mxu3 %v481_v24  ;;  %1076 = vmatpush.bf16.msrb.mxu2 %v2103_v59  ;;  %v2082_v51 = vld [vmem:[%s3522_s5 + $0x50] sm:$0xf]  ;;  %v2353_v53 = vld [vmem:[%s3522_s5 + $0x54] sm:$0xf0]  ;;  %v2360_v58 = vld [vmem:[%s3522_s5 + $0x94] sm:$0xf] }
  0x3c   : > { %1105 = vmatpush.bf16.msrb.mxu3 %v2167_v63  ;;  %v2114_v54 = vld [vmem:[%s3522_s5 + $0x90] sm:$0xf]  ;;  %v2083_v56 = vor.u32 %v2353_v53, %v2082_v51  ;;  %v2116_v59 = vld [vmem:[%s3522_s5 + $0x98] sm:$0xf0]  ;;  %v2074_v61 = vld [vmem:[%s3522_s5 + $0x40] sm:$0xf] }
  0x3d   : > { %716 = vmatpush.bf16.msrb.mxu1 %v2027_v20  ;;  %v2076_v20 = vld [vmem:[%s3522_s5 + $0x48] sm:$0xf0]  ;;  %v2119_v60 = vor.u32 %v2360_v58, %v2116_v59  ;;  %v2351_v62 = vld [vmem:[%s3522_s5 + $0x44] sm:$0xf0]  ;;  %v2106_v63 = vld [vmem:[%s3522_s5 + $0x80] sm:$0xf] }
  0x3e   : > { %v2079_v23 = vor.u32 %v2350_v18, %v2076_v20  ;;  %v2359_v1 = vld [vmem:[%s3522_s5 + $0x84] sm:$0xf0]  ;;  %v2358_v2 = vld [vmem:[%s3522_s5 + $0x84] sm:$0xf]  ;;  %v2108_v3 = vld [vmem:[%s3522_s5 + $0x88] sm:$0xf0] }
  0x3f   : > { %1077 = vmatpush.bf16.msrb.mxu2 %v2095_v4  ;;  %v2107_v5 = vor.u32 %v2359_v1, %v2106_v63  ;;  %v2066_v7 = vld [vmem:[%s3522_s5 + $0x30] sm:$0xf]  ;;  %v2349_v8 = vld [vmem:[%s3522_s5 + $0x34] sm:$0xf0]  ;;  %v2344_v9 = vld [vmem:[%s3522_s5 + $0x14] sm:$0xf] }
  0x40   : > { %1106 = vmatpush.bf16.msrb.mxu3 %v2159_v6  ;;  %v2111_v6 = vor.u32 %v2358_v2, %v2108_v3  ;;  %v2067_v11 = vor.u32 %v2349_v8, %v2066_v7  ;;  %v520_v13 = vld [vmem:[%s3521_s4] sm:$0x3]  ;;  %s443_s15 = scalar_lea.vmem [#allocation2], %s1903_s27 }
  0x41   : > { %717 = vmatpush.bf16.msrb.mxu1 %v2019_v25  ;;  %v2138_v25 = vld [vmem:[%s3522_s5 + $0xc0] sm:$0xf]  ;;  %s1813_s17 = sshll.u32 %s443_s15, 4  ;;  %s1814_s17 = int_to_ptr.vmem [resolvable:$true] %s1813_s17 }
  0x42   : > { %v2139_v27 = vor.u32 %v2367_v26, %v2138_v25  ;;  %v2044_v25 = vld [vmem:[%s3522_s5 + $0x8] sm:$0xf0] }
  0x43   : > { %1078 = vmatpush.bf16.msrb.mxu2 %v2087_v14  ;;  %v2058_v14 = vld [vmem:[%s3522_s5 + $0x20] sm:$0xf] }
  0x44   : > { %1107 = vmatpush.bf16.msrb.mxu3 %v2151_v15  ;;  %v2347_v15 = vld [vmem:[%s3522_s5 + $0x24] sm:$0xf0] }
  0x45   : > { %718 = vmatpush.bf16.msrb.mxu1 %v2011_v28  ;;  %v2348_v28 = vld [vmem:[%s3522_s5 + $0x34] sm:$0xf] }
  0x46   : > { %v2071_v31 = vor.u32 %v2348_v28, %v2068_v29  ;;  %v2042_v28 = vld [vmem:[%s3522_s5] sm:$0xf]  ;;  %v2343_v29 = vld [vmem:[%s3522_s5 + $0x4] sm:$0xf0] }
  0x47   : > { %1079 = vmatpush.bf16.msrb.mxu2 %v2079_v23 }
  0x48   : > { %709 = vmatmul.bf16.gmra.mxu1 %v486_v38 }
  0x49   : > { %719 = vmatpush.bf16.msrb.mxu1 %v2003_v33  ;;  %699 = vmatmul.bf16.gmra.mxu0 %v482_v42  ;;  %v2098_v33 = vld [vmem:[%s3522_s5 + $0x70] sm:$0xf] }
  0x4a   : > { %757 = vmatmul.bf16.gmra.mxu2 %v482_v42  ;;  %v2099_v36 = vor.u32 %v2357_v34, %v2098_v33  ;;  %v2122_v42 = vld [vmem:[%s3522_s5 + $0xa0] sm:$0xf] }
  0x4b   : > { %786 = vmatmul.bf16.gmra.mxu3 %v483_v45  ;;  %1080 = vmatpush.bf16.msrb.mxu2 %v2071_v31  ;;  %v2123_v47 = vor.u32 %v2363_v44, %v2122_v42  ;;  %v2043_v31 = vor.u32 %v2343_v29, %v2042_v28 }
  0x4c   : > { %1018 = vmatpush.bf16.msrb.mxu0 %v2099_v36 }
  0x4d   : > { %720 = vmatpush.bf16.msrb.mxu1 %v1995_v41  ;;  %v2355_v41 = vld [vmem:[%s3522_s5 + $0x64] sm:$0xf0] }
  0x4e   : > { %v2091_v43 = vor.u32 %v2355_v41, %v2090_v40 }
  0x50   : > { %1019 = vmatpush.bf16.msrb.mxu0 %v2091_v43 }
  0x51   : > { %721 = vmatpush.bf16.msrb.mxu1 %v1987_v46  ;;  %v2124_v46 = vld [vmem:[%s3522_s5 + $0xa8] sm:$0xf0] }
  0x54   : > { %1020 = vmatpush.bf16.msrb.mxu0 %v2083_v56 }
  0x55   : > { %722 = vmatpush.bf16.msrb.mxu1 %v1979_v49  ;;  %v2346_v49 = vld [vmem:[%s3522_s5 + $0x24] sm:$0xf] }
  0x58   : > { %723 = vmatmul.bf16.vlgmr.msrb.gmra.mxu1 %v481_v24  ;;  %v2143_v24 = vor.u32 %v2366_v21, %v2140_v22  ;;  %v2050_v21 = vld [vmem:[%s3522_s5 + $0x10] sm:$0xf]  ;;  %v2345_v22 = vld [vmem:[%s3522_s5 + $0x14] sm:$0xf0] }
  0x59   : > { %1047 = vmatpush.bf16.msra.mxu1 %v2163_v0  ;;  %v2075_v0 = vor.u32 %v2351_v62, %v2074_v61  ;;  %v2051_v26 = vor.u32 %v2345_v22, %v2050_v21 }
  0x5a   : > { %762 = vmatmul.bf16.gmra.mxu2 %v484_v16  ;;  %v2146_v16 = vld [vmem:[%s3522_s5 + $0xd0] sm:$0xf]  ;;  %1108 = vmatpush.bf16.msrb.mxu3 %v2143_v24  ;;  %v2342_v24 = vld [vmem:[%s3522_s5 + $0x4] sm:$0xf] }
  0x5b   : > { %791 = vmatmul.bf16.gmra.mxu3 %v485_v52  ;;  %v2147_v19 = vor.u32 %v2369_v17, %v2146_v16  ;;  %1021 = vmatpush.bf16.msrb.mxu0 %v2075_v0  ;;  %v3106_v16 = vperm.slane %v520_v13, 1  ;;  %v2059_v17 = vor.u32 %v2347_v15, %v2058_v14 }
  0x5d   : > { %1048 = vmatpush.bf16.msra.mxu1 %v2155_v10  ;;  %v2052_v10 = vld [vmem:[%s3522_s5 + $0x18] sm:$0xf0] }
  0x5e   : > { %1109 = vmatpush.bf16.msrb.mxu3 %v2135_v35  ;;  %v2055_v12 = vor.u32 %v2344_v9, %v2052_v10 }
  0x5f   : > { %1022 = vmatpush.bf16.msrb.mxu0 %v2067_v11 }
  0x61   : > { %1049 = vmatpush.bf16.msra.mxu1 %v2147_v19 }
  0x63   : > { %1023 = vmatpush.bf16.msrb.mxu0 %v2059_v17 }
  0x65   : > { %1050 = vmatpush.bf16.msra.mxu1 %v2139_v27  ;;  %v2047_v27 = vor.u32 %v2342_v24, %v2044_v25 }
  0x67   : > { %1024 = vmatpush.bf16.msrb.mxu0 %v2051_v26 }
  0x68   : > { %728 = vmatmul.bf16.gmra.mxu1 %v483_v45  ;;  %v2362_v45 = vld [vmem:[%s3522_s5 + $0xa4] sm:$0xf] }
  0x69   : > { %v2127_v48 = vor.u32 %v2362_v45, %v2124_v46 }
  0x6a   : > { %767 = vmatmul.bf16.gmra.mxu2 %v486_v38  ;;  %v2365_v38 = vld [vmem:[%s3522_s5 + $0xb4] sm:$0xf0] }
  0x6b   : > { %796 = vmatmul.bf16.gmra.mxu3 %v487_v55  ;;  %v2131_v39 = vor.u32 %v2365_v38, %v2130_v37  ;;  %1025 = vmatpush.bf16.msrb.mxu0 %v2043_v31 }
  0x6c   : > { %1110 = vmatpush.bf16.msrb.mxu3 %v2127_v48 }
  0x6d   : > { %1051 = vmatpush.bf16.msra.mxu1 %v2131_v39 }
  0x70   : > { %1111 = vmatpush.bf16.msrb.mxu3 %v2119_v60 }
  0x71   : > { %1052 = vmatpush.bf16.msra.mxu1 %v2123_v47  ;;  %v3141_v47 = vperm.slane %v520_v13, 0 }
  0x74   : > { %1112 = vmatpush.bf16.msrb.mxu3 %v2111_v6 }
  0x78   : > { %733 = vmatmul.bf16.gmra.mxu1 %v485_v52  ;;  %v2063_v52 = vor.u32 %v2346_v49, %v2060_v50 }
  0x7a   : > { %1081 = vmatpush.bf16.msrb.mxu2 %v2063_v52 }
  0x7e   : > { %1082 = vmatpush.bf16.msrb.mxu2 %v2055_v12 }
  0x82   : > { %1083 = vmatpush.bf16.msrb.mxu2 %v2047_v27 }
  0x88   : > { %738 = vmatmul.bf16.gmra.mxu1 %v487_v55  ;;  %v2361_v55 = vld [vmem:[%s3522_s5 + $0x94] sm:$0xf0] }
  0x89   : > { %v2115_v57 = vor.u32 %v2361_v55, %v2114_v54 }
  0x8b   : > { %1053 = vmatpush.bf16.msra.mxu1 %v2115_v57 }
  0x8f   : > { %1054 = vmatpush.bf16.msra.mxu1 %v2107_v5 }
  0xb5   : > { %v3083_v4 = vpop.f32.mrf.mxu1 }
  0xb6   : > { %v695_v37 = vpop.f32.mrf.mxu0 }
  0xb7   : > { %v696_v52 = vadd.f32 %v695_v37, %v3141_v47 }
  0xbd   : > { %v3108_v18 = vpop.f32.mrf.mxu1  ;;  %v753_v19 = vpop.f32.mrf.mxu2 }
  0xbe   : > { %v782_v20 = vpop.f32.mrf.mxu3  ;;  %v754_v23 = vadd.f32 %v753_v19, %v3106_v16  ;;  %v697_v45 = vpop.f32.mrf.mxu0 }
  0xbf   : > { %v698_v55 = vadd.f32 %v697_v45, %v3141_v47  ;;  %v2379_v45 = vld [vmem:[%s3523_s6 + $0x28] sm:$0xff] }
  0xc0   : > { %v783_v30 = vadd.f32 %v782_v20, %v754_v23 }
  0xc2   : > { %2456 = vtanh.f32 %v783_v30 }
  0xc5   : > { %v3129_v32 = vpop.f32.mrf.mxu1  ;;  %v755_v33 = vpop.f32.mrf.mxu2 }
  0xc6   : > { %v756_v34 = vadd.f32 %v755_v33, %v3106_v16  ;;  %v784_v35 = vpop.f32.mrf.mxu3  ;;  %v700_v61 = vpop.f32.mrf.mxu0 }
  0xc7   : > { %v701_v9 = vadd.f32 %v700_v61, %v3141_v47  ;;  %v2374_v61 = vld [vmem:[%s3523_s6] sm:$0xff] }
  0xc8   : > { %v785_v36 = vadd.f32 %v784_v35, %v756_v34  ;;  %v3134_v40 = vpop.eup %2456  ;;  %v706_v35 = vadd.f32 %v3083_v4, %v3141_v47 }
  0xca   : > { %2458 = vtanh.f32 %v785_v36  ;;  %v2381_v36 = vld [vmem:[%s3523_s6 + $0x38] sm:$0xff] }
  0xcb   : > { %1262 = vmatpush.bf16.msra.mxu0 %v2381_v36 }
  0xcd   : > { %v3132_v38 = vpop.f32.mrf.mxu1  ;;  %v758_v39 = vpop.f32.mrf.mxu2 }
  0xce   : > { %v787_v41 = vpop.f32.mrf.mxu3  ;;  %v759_v43 = vadd.f32 %v758_v39, %v3106_v16  ;;  %v702_v12 = vpop.f32.mrf.mxu0  ;;  %v708_v39 = vadd.f32 %v3108_v18, %v3141_v47 }
  0xcf   : > { %v703_v14 = vadd.f32 %v702_v12, %v3141_v47 }
  0xd0   : > { %v3136_v42 = vpop.eup %2458  ;;  %v788_v46 = vadd.f32 %v787_v41, %v759_v43 }
  0xd1   : > { %v819_v44 = vpack.c.bf16 %v3136_v42, %v3134_v40 }
  0xd2   : > { %2460 = vtanh.f32 %v788_v46 }
  0xd3   : > { %1055 = vmatmul.bf16.vlgmr.msra.gmra.mxu1 %v819_v44  ;;  %1113 = vmatmul.bf16.vlgmr.msrb.gmra.mxu3 %v819_v44 }
  0xd5   : > { %v724_v48 = vpop.f32.mrf.mxu1  ;;  %v760_v49 = vpop.f32.mrf.mxu2 }
  0xd6   : > { %v761_v50 = vadd.f32 %v760_v49, %v3106_v16  ;;  %v789_v51 = vpop.f32.mrf.mxu3  ;;  %v725_v54 = vadd.f32 %v724_v48, %v696_v52 }
  0xd8   : > { %v790_v53 = vadd.f32 %v789_v51, %v761_v50  ;;  %v3146_v58 = vpop.eup %2460  ;;  %v711_v51 = vadd.f32 %v3129_v32, %v3141_v47  ;;  %v2378_v32 = vld [vmem:[%s3523_s6 + $0x20] sm:$0xff] }
  0xda   : > { %2462 = vtanh.f32 %v790_v53  ;;  %v713_v53 = vadd.f32 %v3132_v38, %v3141_v47  ;;  %v2377_v38 = vld [vmem:[%s3523_s6 + $0x18] sm:$0xff]  ;;  %v2376_v47 = vld [vmem:[%s3523_s6 + $0x10] sm:$0xff] }
  0xdb   : > { %2464 = vtanh.f32 %v725_v54 }
  0xdd   : > { %v726_v56 = vpop.f32.mrf.mxu1  ;;  %v763_v57 = vpop.f32.mrf.mxu2 }
  0xde   : > { %v727_v59 = vadd.f32 %v726_v56, %v698_v55  ;;  %v792_v60 = vpop.f32.mrf.mxu3  ;;  %v764_v63 = vadd.f32 %v763_v57, %v3106_v16 }
  0xe0   : > { %v3148_v62 = vpop.eup %2462  ;;  %2466 = vtanh.f32 %v727_v59  ;;  %v793_v1 = vadd.f32 %v792_v60, %v764_v63  ;;  %v2375_v60 = vld [vmem:[%s3523_s6 + $0x8] sm:$0xff] }
  0xe1   : > { %v821_v0 = vpack.c.bf16 %v3148_v62, %v3146_v58  ;;  %v3153_v2 = vpop.eup %2464 }
  0xe2   : > { %2468 = vtanh.f32 %v793_v1 }
  0xe3   : > { %1060 = vmatmul.bf16.gmra.mxu1 %v821_v0  ;;  %1118 = vmatmul.bf16.gmra.mxu3 %v821_v0 }
  0xe5   : > { %v729_v3 = vpop.f32.mrf.mxu1  ;;  %v765_v5 = vpop.f32.mrf.mxu2 }
  0xe6   : > { %v3155_v6 = vpop.eup %2466  ;;  %v766_v7 = vadd.f32 %v765_v5, %v3106_v16  ;;  %v794_v8 = vpop.f32.mrf.mxu3  ;;  %v730_v13 = vadd.f32 %v729_v3, %v701_v9 }
  0xe7   : > { %v818_v10 = vpack.c.bf16 %v3155_v6, %v3153_v2 }
  0xe8   : > { %v795_v11 = vadd.f32 %v794_v8, %v766_v7  ;;  %v3162_v19 = vpop.eup %2468 }
  0xe9   : > { %1026 = vmatmul.bf16.vlgmr.msrb.gmra.mxu0 %v818_v10  ;;  %1084 = vmatmul.bf16.vlgmr.msrb.gmra.mxu2 %v818_v10 }
  0xea   : > { %2470 = vtanh.f32 %v795_v11 }
  0xeb   : > { %2472 = vtanh.f32 %v730_v13 }
  0xed   : > { %v731_v15 = vpop.f32.mrf.mxu1  ;;  %v768_v17 = vpop.f32.mrf.mxu2 }
  0xee   : > { %v732_v20 = vadd.f32 %v731_v15, %v703_v14  ;;  %v797_v21 = vpop.f32.mrf.mxu3  ;;  %v769_v23 = vadd.f32 %v768_v17, %v3106_v16 }
  0xf0   : > { %v3164_v22 = vpop.eup %2470  ;;  %2474 = vtanh.f32 %v732_v20  ;;  %v798_v25 = vadd.f32 %v797_v21, %v769_v23 }
  0xf1   : > { %v823_v24 = vpack.c.bf16 %v3164_v22, %v3162_v19  ;;  %v3169_v26 = vpop.eup %2472 }
  0xf2   : > { %2476 = vtanh.f32 %v798_v25 }
  0xf3   : > { %1065 = vmatmul.bf16.gmra.mxu1 %v823_v24  ;;  %1123 = vmatmul.bf16.gmra.mxu3 %v823_v24 }
  0xf5   : > { %v734_v27 = vpop.f32.mrf.mxu1  ;;  %v770_v28 = vpop.f32.mrf.mxu2 }
  0xf6   : > { %v3171_v29 = vpop.eup %2474  ;;  %v771_v30 = vadd.f32 %v770_v28, %v3106_v16  ;;  %v799_v31 = vpop.f32.mrf.mxu3  ;;  %v735_v37 = vadd.f32 %v734_v27, %v706_v35  ;;  %v2380_v16 = vld [vmem:[%s3523_s6 + $0x30] sm:$0xff] }
  0xf7   : > { %v820_v33 = vpack.c.bf16 %v3171_v29, %v3169_v26  ;;  %1263 = vmatpush.bf16.msra.mxu0 %v2380_v16 }
  0xf8   : > { %v800_v34 = vadd.f32 %v799_v31, %v771_v30  ;;  %v3186_v43 = vpop.eup %2476 }
  0xf9   : > { %1031 = vmatmul.bf16.gmra.mxu0 %v820_v33  ;;  %1089 = vmatmul.bf16.gmra.mxu2 %v820_v33 }
  0xfa   : > { %2478 = vtanh.f32 %v800_v34 }
  0xfb   : > { %2480 = vtanh.f32 %v735_v37  ;;  %1264 = vmatpush.bf16.msra.mxu0 %v2379_v45 }
  0xfd   : > { %v736_v41 = vpop.f32.mrf.mxu1 }
  0xfe   : > { %v737_v4 = vadd.f32 %v736_v41, %v708_v39 }
  0xff   : > { %1265 = vmatpush.bf16.msra.mxu0 %v2378_v32 }
 0x100   : > { %v3188_v44 = vpop.eup %2478  ;;  %2482 = vtanh.f32 %v737_v4 }
 0x101   : > { %v825_v46 = vpack.c.bf16 %v3188_v44, %v3186_v43  ;;  %v3195_v18 = vpop.eup %2480 }
 0x103   : > { %1070 = vmatmul.bf16.gmra.mxu1 %v825_v46  ;;  %1128 = vmatmul.bf16.gmra.mxu3 %v825_v46 }
 0x104   : > { %1266 = vmatpush.bf16.msra.mxu0 %v2377_v38 }
 0x105   : > { %v739_v48 = vpop.f32.mrf.mxu1 }
 0x106   : > { %v3197_v49 = vpop.eup %2482  ;;  %v740_v52 = vadd.f32 %v739_v48, %v711_v51 }
 0x107   : > { %v822_v50 = vpack.c.bf16 %v3197_v49, %v3195_v18 }
 0x108   : > { %2484 = vtanh.f32 %v740_v52  ;;  %1267 = vmatpush.bf16.msra.mxu0 %v2376_v47 }
 0x109   : > { %1036 = vmatmul.bf16.gmra.mxu0 %v822_v50  ;;  %1094 = vmatmul.bf16.gmra.mxu2 %v822_v50 }
 0x10c   : > { %1268 = vmatpush.bf16.msra.mxu0 %v2375_v60 }
 0x10d   : > { %v741_v54 = vpop.f32.mrf.mxu1 }
 0x10e   : > { %v742_v55 = vadd.f32 %v741_v54, %v713_v53  ;;  %v3205_v56 = vpop.eup %2484 }
 0x110   : > { %2486 = vtanh.f32 %v742_v55  ;;  %1269 = vmatpush.bf16.msra.mxu0 %v2374_v61 }
 0x116   : > { %v3207_v57 = vpop.eup %2486 }
 0x117   : > { %v824_v59 = vpack.c.bf16 %v3207_v57, %v3205_v56 }
 0x119   : > { %1041 = vmatmul.bf16.gmra.mxu0 %v824_v59  ;;  %1099 = vmatmul.bf16.gmra.mxu2 %v824_v59 }
 0x150   : > { %v1056_v63 = vpop.f32.mrf.mxu1 }
 0x156   : > { %v1114_v0 = vpop.f32.mrf.mxu3 }
 0x158   : > { %v1058_v1 = vpop.f32.mrf.mxu1 }
 0x15e   : > { %v1116_v5 = vpop.f32.mrf.mxu3 }
 0x160   : > { %v1061_v8 = vpop.f32.mrf.mxu1 }
 0x166   : > { %v1027_v3 = vpop.f32.mrf.mxu0  ;;  %v1119_v13 = vpop.f32.mrf.mxu3 }
 0x167   : > { %v1057_v11 = vadd.f32 %v1056_v63, %v1027_v3 }
 0x168   : > { %v1063_v27 = vpop.f32.mrf.mxu1 }
 0x169   : > { %v1150_v17 = vmul.f32 0.01, %v1057_v11  ;;  %vm1134_vm1 = vcmp.gt.f32.partialorder %v1057_v11, 0.0 }
 0x16b   : > { %v1166_v28 = vsel %vm1134_vm1, %v1057_v11, %v1150_v17 }
 0x16c   : > { %v1085_v7 = vpop.f32.mrf.mxu2 }
 0x16d   : > { %v1115_v10 = vadd.f32 %v1114_v0, %v1085_v7 }
 0x16e   : > { %v1029_v9 = vpop.f32.mrf.mxu0  ;;  %v1121_v35 = vpop.f32.mrf.mxu3 }
 0x16f   : > { %v1059_v12 = vadd.f32 %v1058_v1, %v1029_v9  ;;  %v1151_v14 = vmul.f32 0.01, %v1115_v10  ;;  %vm1135_vm0 = vcmp.gt.f32.partialorder %v1115_v10, 0.0 }
 0x170   : > { %v1066_v45 = vpop.f32.mrf.mxu1 }
 0x171   : > { %v1152_v20 = vmul.f32 0.01, %v1059_v12  ;;  %vm1136_vm2 = vcmp.gt.f32.partialorder %v1059_v12, 0.0  ;;  %v1167_v24 = vsel %vm1135_vm0, %v1115_v10, %v1151_v14 }
 0x172   : > { %v1182_v33 = vmul.f32 %v1167_v24, %v1166_v28 }
 0x173   : > { %v1168_v30 = vsel %vm1136_vm2, %v1059_v12, %v1152_v20 }
 0x174   : > { %v1087_v15 = vpop.f32.mrf.mxu2 }
 0x175   : > { %v1117_v21 = vadd.f32 %v1116_v5, %v1087_v15 }
 0x176   : > { %v1032_v23 = vpop.f32.mrf.mxu0  ;;  %v1124_v53 = vpop.f32.mrf.mxu3 }
 0x177   : > { %vm1137_vm3 = vcmp.gt.f32.partialorder %v1117_v21, 0.0  ;;  %v1153_v25 = vmul.f32 0.01, %v1117_v21  ;;  %v1062_v41 = vadd.f32 %v1061_v8, %v1032_v23 }
 0x178   : > { %v1068_v63 = vpop.f32.mrf.mxu1 }
 0x179   : > { %v1169_v31 = vsel %vm1137_vm3, %v1117_v21, %v1153_v25  ;;  %v1154_v50 = vmul.f32 0.01, %v1062_v41  ;;  %vm1138_vm5 = vcmp.gt.f32.partialorder %v1062_v41, 0.0 }
 0x17a   : > { %v1183_v34 = vmul.f32 %v1169_v31, %v1168_v30 }
 0x17b   : > { %v1170_v32 = vsel %vm1138_vm5, %v1062_v41, %v1154_v50 }
 0x17c   : > { %v1090_v36 = vpop.f32.mrf.mxu2  ;;  %v1190_v37 = vpack.c.bf16 %v1183_v34, %v1182_v33 }
 0x17d   : > { %v1120_v39 = vadd.f32 %v1119_v13, %v1090_v36 }
 0x17e   : > { %v1034_v16 = vpop.f32.mrf.mxu0  ;;  %1270 = vmatmul.bf16.vlgmr.msra.gmra.mxu0 %v1190_v37  ;;  %v1126_v7 = vpop.f32.mrf.mxu3 }
 0x17f   : > { %v1064_v4 = vadd.f32 %v1063_v27, %v1034_v16  ;;  %v1155_v46 = vmul.f32 0.01, %v1120_v39  ;;  %vm1139_vm4 = vcmp.gt.f32.partialorder %v1120_v39, 0.0 }
 0x180   : > { %v1071_v15 = vpop.f32.mrf.mxu1 }
 0x181   : > { %v1156_v51 = vmul.f32 0.01, %v1064_v4  ;;  %vm1140_vm6 = vcmp.gt.f32.partialorder %v1064_v4, 0.0  ;;  %v1171_v59 = vsel %vm1139_vm4, %v1120_v39, %v1155_v46 }
 0x182   : > { %v1184_v60 = vmul.f32 %v1171_v59, %v1170_v32 }
 0x183   : > { %v1172_v38 = vsel %vm1140_vm6, %v1064_v4, %v1156_v51 }
 0x184   : > { %v1092_v48 = vpop.f32.mrf.mxu2 }
 0x185   : > { %v1122_v52 = vadd.f32 %v1121_v35, %v1092_v48 }
 0x186   : > { %v1037_v54 = vpop.f32.mrf.mxu0  ;;  %v1129_v27 = vpop.f32.mrf.mxu3 }
 0x187   : > { %vm1141_vm7 = vcmp.gt.f32.partialorder %v1122_v52, 0.0  ;;  %v1157_v55 = vmul.f32 0.01, %v1122_v52  ;;  %v1067_v8 = vadd.f32 %v1066_v45, %v1037_v54 }
 0x188   : > { %v1073_v36 = vpop.f32.mrf.mxu1 }
 0x189   : > { %v1173_v47 = vsel %vm1141_vm7, %v1122_v52, %v1157_v55  ;;  %v1158_v12 = vmul.f32 0.01, %v1067_v8  ;;  %vm1142_vm9 = vcmp.gt.f32.partialorder %v1067_v8, 0.0 }
 0x18a   : > { %v1185_v61 = vmul.f32 %v1173_v47, %v1172_v38  ;;  %v3229_v38 = vld [vmem:[%s3524_s7] ss:$0 sm:$0xff] }
 0x18b   : > { %v1174_v23 = vsel %vm1142_vm9, %v1067_v8, %v1158_v12 }
 0x18c   : > { %v1095_v0 = vpop.f32.mrf.mxu2  ;;  %v1191_v1 = vpack.c.bf16 %v1185_v61, %v1184_v60 }
 0x18d   : > { %v1125_v5 = vadd.f32 %v1124_v53, %v1095_v0 }
 0x18e   : > { %v1039_v3 = vpop.f32.mrf.mxu0  ;;  %1275 = vmatmul.bf16.gmra.mxu0 %v1191_v1  ;;  %v1131_v41 = vpop.f32.mrf.mxu3 }
 0x18f   : > { %v1069_v9 = vadd.f32 %v1068_v63, %v1039_v3  ;;  %v1159_v10 = vmul.f32 0.01, %v1125_v5  ;;  %vm1143_vm8 = vcmp.gt.f32.partialorder %v1125_v5, 0.0 }
 0x191   : > { %v1160_v13 = vmul.f32 0.01, %v1069_v9  ;;  %vm1144_vm10 = vcmp.gt.f32.partialorder %v1069_v9, 0.0  ;;  %v1175_v21 = vsel %vm1143_vm8, %v1125_v5, %v1159_v10 }
 0x192   : > { %v1186_v28 = vmul.f32 %v1175_v21, %v1174_v23 }
 0x193   : > { %v1176_v24 = vsel %vm1144_vm10, %v1069_v9, %v1160_v13 }
 0x194   : > { %v1097_v11 = vpop.f32.mrf.mxu2 }
 0x195   : > { %v1127_v14 = vadd.f32 %v1126_v7, %v1097_v11 }
 0x196   : > { %v1042_v17 = vpop.f32.mrf.mxu0 }
 0x197   : > { %vm1145_vm11 = vcmp.gt.f32.partialorder %v1127_v14, 0.0  ;;  %v1161_v20 = vmul.f32 0.01, %v1127_v14  ;;  %v1072_v37 = vadd.f32 %v1071_v15, %v1042_v17 }
 0x199   : > { %v1177_v25 = vsel %vm1145_vm11, %v1127_v14, %v1161_v20  ;;  %v1162_v45 = vmul.f32 0.01, %v1072_v37  ;;  %vm1146_vm13 = vcmp.gt.f32.partialorder %v1072_v37, 0.0 }
 0x19a   : > { %v1187_v30 = vmul.f32 %v1177_v25, %v1176_v24 }
 0x19b   : > { %v1178_v52 = vsel %vm1146_vm13, %v1072_v37, %v1162_v45 }
 0x19c   : > { %v1100_v31 = vpop.f32.mrf.mxu2  ;;  %v1192_v33 = vpack.c.bf16 %v1187_v30, %v1186_v28 }
 0x19d   : > { %v1130_v35 = vadd.f32 %v1129_v27, %v1100_v31 }
 0x19e   : > { %v1044_v34 = vpop.f32.mrf.mxu0  ;;  %1280 = vmatmul.bf16.gmra.mxu0 %v1192_v33 }
 0x19f   : > { %v1074_v16 = vadd.f32 %v1073_v36, %v1044_v34  ;;  %v1163_v39 = vmul.f32 0.01, %v1130_v35  ;;  %vm1147_vm12 = vcmp.gt.f32.partialorder %v1130_v35, 0.0 }
 0x1a1   : > { %v1164_v46 = vmul.f32 0.01, %v1074_v16  ;;  %vm1148_vm14 = vcmp.gt.f32.partialorder %v1074_v16, 0.0  ;;  %v1179_v51 = vsel %vm1147_vm12, %v1130_v35, %v1163_v39 }
 0x1a2   : > { %v1188_v55 = vmul.f32 %v1179_v51, %v1178_v52 }
 0x1a3   : > { %v1180_v53 = vsel %vm1148_vm14, %v1074_v16, %v1164_v46 }
 0x1a4   : > { %v1102_v4 = vpop.f32.mrf.mxu2 }
 0x1a5   : > { %v1132_v48 = vadd.f32 %v1131_v41, %v1102_v4 }
 0x1a7   : > { %vm1149_vm15 = vcmp.gt.f32.partialorder %v1132_v48, 0.0  ;;  %v1165_v50 = vmul.f32 0.01, %v1132_v48 }
 0x1a9   : > { %v1181_v54 = vsel %vm1149_vm15, %v1132_v48, %v1165_v50 }
 0x1aa   : > { %v1189_v59 = vmul.f32 %v1181_v54, %v1180_v53 }
 0x1ac   : > { %v1193_v32 = vpack.c.bf16 %v1189_v59, %v1188_v55 }
 0x1ae   : > { %1285 = vmatmul.bf16.gmra.mxu0 %v1193_v32 }
 0x1fb   : > { %v1271_v47 = vpop.f32.mrf.mxu0 }
 0x1fc   : > { %v1272_v60 = vadd.f32 %v3229_v38, %v1271_v47  ;;  %v2389_v47 = vld [vmem:[%s3525_s8 + $0x38] sm:$0xff] }
 0x1fd   : > { %1688 = vmatpush.bf16.msrb.mxu1 %v2389_v47  ;;  %v1477_v47 = vld [vmem:[%s3303_s20 + $0x10] sm:$0xff] }
 0x1fe   : > { %v2200_v61 = vmul.f32 -1.442695, %v1272_v60 }
 0x200   : > { %2488 = vpow2.f32 %v2200_v61 }
 0x203   : > { %v1273_v63 = vpop.f32.mrf.mxu0 }
 0x204   : > { %v1274_v0 = vadd.f32 %v3229_v38, %v1273_v63 }
 0x206   : > { %v2489_v1 = vpop.eup %2488  ;;  %v2201_v3 = vmul.f32 -1.442695, %v1274_v0  ;;  %v2397_v0 = vld [vmem:[%s3525_s8 + $0x78] sm:$0xff] }
 0x207   : > { %v1315_v5 = vadd.f32 1.0, %v2489_v1  ;;  %1701 = vmatpush.bf16.msra.mxu2 %v2397_v0 }
 0x208   : > { %2490 = vpow2.f32 %v2201_v3 }
 0x209   : > { %2492 = vrcp.f32 %v1315_v5  ;;  %vm1328_vm1 = vweird.f32 %v1315_v5  ;;  %v1332_v16 = vand.u32 2147483647, %v1315_v5  ;;  %v1334_v39 = vand.u32 2147483648, %v1315_v5 }
 0x20b   : > { %v1276_v7 = vpop.f32.mrf.mxu0  ;;  %v1335_v52 = vor.u32 1.1754944e-38, %v1334_v39  ;;  %vm1333_vm6 = vcmp.eq.f32.partialorder %v1332_v16, 8.507059e+37 }
 0x20c   : > { %v1277_v8 = vadd.f32 %v3229_v38, %v1276_v7 }
 0x20e   : > { %v2491_v9 = vpop.eup %2490  ;;  %v2202_v10 = vmul.f32 -1.442695, %v1277_v8 }
 0x20f   : > { %v2493_v11 = vpop.eup %2492  ;;  %v1316_v12 = vadd.f32 1.0, %v2491_v9 }
 0x210   : > { %2494 = vpow2.f32 %v2202_v10  ;;  %v1324_v13 = vmul.f32 %v2493_v11, %v1315_v5  ;;  %vm1329_vm0 = vweird.f32 %v2493_v11  ;;  %v2388_v10 = vld [vmem:[%s3525_s8 + $0x30] sm:$0xff] }
 0x211   : > { %2496 = vrcp.f32 %v1316_v12  ;;  %vm1330_vm3 = vmor %vm1328_vm1, %vm1329_vm0  ;;  %v1349_v46 = vand.u32 2147483648, %v1316_v12  ;;  %vm1343_vm4 = vweird.f32 %v1316_v12  ;;  %v1347_v50 = vand.u32 2147483647, %v1316_v12  ;;  %1689 = vmatpush.bf16.msrb.mxu1 %v2388_v10 }
 0x212   : > { %v1325_v20 = vsub.f32 1.0, %v1324_v13 }
 0x213   : > { %v1278_v14 = vpop.f32.mrf.mxu0  ;;  %v1350_v32 = vor.u32 1.1754944e-38, %v1349_v46  ;;  %vm1348_vm7 = vcmp.eq.f32.partialorder %v1347_v50, 8.507059e+37 }
 0x214   : > { %v1279_v15 = vadd.f32 %v3229_v38, %v1278_v14  ;;  %v1326_v27 = vmul.f32 %v2493_v11, %v1325_v20 }
 0x216   : > { %v2495_v17 = vpop.eup %2494  ;;  %v2203_v21 = vmul.f32 -1.442695, %v1279_v15  ;;  %v1327_v35 = vadd.f32 %v2493_v11, %v1326_v27 }
 0x217   : > { %v2497_v23 = vpop.eup %2496  ;;  %v3235_v24 = vadd.f32 1.0, %v2495_v17 }
 0x218   : > { %v1339_v25 = vmul.f32 %v2497_v23, %v1316_v12  ;;  %2498 = vpow2.f32 %v2203_v21  ;;  %vm1344_vm2 = vweird.f32 %v2497_v23  ;;  %v1331_v48 = vsel %vm1330_vm3, %v2493_v11, %v1327_v35 }
 0x219   : > { %2500 = vrcp.f32 %v3235_v24  ;;  %vm1345_vm5 = vmor %vm1343_vm4, %vm1344_vm2  ;;  %v1336_v59 = vsel %vm1333_vm6, %v1335_v52, %v1331_v48  ;;  %v1362_v9 = vand.u32 2147483647, %v3235_v24  ;;  %v1364_v14 = vand.u32 2147483648, %v3235_v24  ;;  %v2386_v48 = vld [vmem:[%s3525_s8 + $0x20] sm:$0xff] }
 0x21a   : > { %v1340_v28 = vsub.f32 1.0, %v1339_v25  ;;  %v1451_v7 = vsub.f32 1.0, %v1336_v59  ;;  %vm1358_vm9 = vweird.f32 %v3235_v24  ;;  %v1443_v25 = vmul.f32 %v3153_v2, %v1336_v59 }
 0x21b   : > { %v1281_v30 = vpop.f32.mrf.mxu0  ;;  %vm3281_vm11 = vcmp.eq.f32.partialorder %v1362_v9, 8.507059e+37  ;;  %vm1539_vm6 = vcmask 1041409  }
 0x21c   : > { %v1341_v31 = vmul.f32 %v2497_v23, %v1340_v28  ;;  %v1282_v33 = vadd.f32 %v3229_v38, %v1281_v30  ;;  %v1459_v17 = vmul.f32 %v3134_v40, %v1451_v7  ;;  %v2394_v7 = vld [vmem:[%s3525_s8 + $0x60] sm:$0xff] }
 0x21e   : > { %v2499_v34 = vpop.eup %2498  ;;  %v2204_v36 = vmul.f32 -1.442695, %v1282_v33  ;;  %v1342_v4 = vadd.f32 %v2497_v23, %v1341_v31 }
 0x21f   : > { %v3239_v37 = vpop.eup %2500  ;;  %v3241_v41 = vadd.f32 1.0, %v2499_v34 }
 0x220   : > { %v1354_v45 = vmul.f32 %v3239_v37, %v3235_v24  ;;  %2502 = vpow2.f32 %v2204_v36  ;;  %v1346_v54 = vsel %vm1345_vm5, %v2497_v23, %v1342_v4  ;;  %vm1359_vm8 = vweird.f32 %v3239_v37  ;;  %v2396_v23 = vld [vmem:[%s3525_s8 + $0x70] sm:$0xff]  ;;  %v2387_v24 = vld [vmem:[%s3525_s8 + $0x28] sm:$0xff] }
 0x221   : > { %2504 = vrcp.f32 %v3241_v41  ;;  %v1351_v3 = vsel %vm1348_vm7, %v1350_v32, %v1346_v54  ;;  %vm3277_vm10 = vmor %vm1358_vm9, %vm1359_vm8  ;;  %v1377_v40 = vand.u32 2147483647, %v3241_v41  ;;  %v1379_v33 = vand.u32 2147483648, %v3241_v41  ;;  %1702 = vmatpush.bf16.msra.mxu2 %v2396_v23  ;;  %1690 = vmatpush.bf16.msrb.mxu1 %v2387_v24  ;;  %v1476_v54 = vld [vmem:[%s3303_s20 + $0x8] sm:$0xff]  ;;  %v2384_v23 = vld [vmem:[%s3525_s8 + $0x10] sm:$0xff] }
 0x222   : > { %v1355_v51 = vsub.f32 1.0, %v1354_v45  ;;  %v1452_v11 = vsub.f32 1.0, %v1351_v3  ;;  %v1365_v36 = vor.u32 1.1754944e-38, %v1364_v14  ;;  %vm1373_vm13 = vweird.f32 %v3241_v41 }
 0x223   : > { %v1283_v53 = vpop.f32.mrf.mxu0  ;;  %vm3313_vm14 = vcmp.eq.f32.partialorder %v1377_v40, 8.507059e+37 }
 0x224   : > { %v1284_v55 = vadd.f32 %v3229_v38, %v1283_v53  ;;  %v1356_v61 = vmul.f32 %v3239_v37, %v1355_v51  ;;  %v1460_v31 = vmul.f32 %v3136_v42, %v1452_v11  ;;  %v3305_v42 = vadd.f32 %v1459_v17, %v1443_v25  ;;  %v1475_v53 = vld [vmem:[%s3303_s20] sm:$0xff] }
 0x225   : > { %v1380_v51 = vor.u32 1.1754944e-38, %v1379_v33  ;;  %1691 = vmatpush.bf16.msrb.mxu1 %v2386_v48  ;;  %v1491_v11 = vrot.slane %v1477_v47, 4 }
 0x226   : > { %v2503_v60 = vpop.eup %2502  ;;  %v2205_v63 = vmul.f32 -1.442695, %v1284_v55  ;;  %v1357_v12 = vadd.f32 %v3239_v37, %v1356_v61  ;;  %v1485_v61 = vrot.slane %v1476_v54, 4 }
 0x227   : > { %v3254_v1 = vpop.eup %2504  ;;  %v3256_v5 = vadd.f32 1.0, %v2503_v60  ;;  %v1479_v60 = vrot.slane %v1475_v53, 4 }
 0x228   : > { %v1369_v8 = vmul.f32 %v3254_v1, %v3241_v41  ;;  %2506 = vpow2.f32 %v2205_v63  ;;  %v1361_v2 = vsel %vm3277_vm10, %v3239_v37, %v1357_v12  ;;  %vm1374_vm12 = vweird.f32 %v3254_v1 }
 0x229   : > { %2508 = vrcp.f32 %v3256_v5  ;;  %v1444_v37 = vmul.f32 %v3155_v6, %v1351_v3  ;;  %v1366_v45 = vsel %vm3281_vm11, %v1365_v36, %v1361_v2  ;;  %v2395_v6 = vld [vmem:[%s3525_s8 + $0x68] sm:$0xff]  ;;  %vm3328_vm15 = vmor %vm1373_vm13, %vm1374_vm12  ;;  %vm1388_vm0 = vweird.f32 %v3256_v5  ;;  %v1478_v2 = vld [vmem:[%s3303_s20 + $0x18] sm:$0xff] }
 0x22a   : > { %v1370_v13 = vsub.f32 1.0, %v1369_v8  ;;  %v1392_v59 = vand.u32 2147483647, %v3256_v5  ;;  %1703 = vmatpush.bf16.msra.mxu2 %v2395_v6  ;;  %v1453_v63 = vsub.f32 1.0, %v1366_v45  ;;  %v1394_v8 = vand.u32 2147483648, %v3256_v5 }
 0x22b   : > { %v1286_v15 = vpop.f32.mrf.mxu0  ;;  %v3324_v50 = vadd.f32 %v1460_v31, %v1444_v37  ;;  %v1480_v9 = vadd.f32 %v1479_v60, %v1475_v53  ;;  %v1486_v10 = vadd.f32 %v1485_v61, %v1476_v54  ;;  %v1497_v48 = vrot.slane %v1478_v2, 4  ;;  %v2403_v60 = vld [vmem:[%s3527_s10 + $0x28] sm:$0xff] }
 0x22c   : > { %v1371_v20 = vmul.f32 %v3254_v1, %v1370_v13  ;;  %v1287_v21 = vadd.f32 %v3229_v38, %v1286_v15  ;;  %v3351_v13 = vmul.f32 %v3169_v26, %v1366_v45  ;;  %v2393_v26 = vld [vmem:[%s3525_s8 + $0x58] sm:$0xff]  ;;  %vm1393_vm3 = vcmp.eq.f32.partialorder %v1392_v59, 8.507059e+37 }
 0x22d   : > { %v1481_v25 = vrot.slane %v1480_v9, 2  ;;  %v1487_v27 = vrot.slane %v1486_v10, 2  ;;  %v1461_v24 = vmul.f32 %v3146_v58, %v1453_v63  ;;  %v1395_v31 = vor.u32 1.1754944e-38, %v1394_v8  ;;  %v2383_v58 = vld [vmem:[%s3525_s8 + $0x8] sm:$0xff] }
 0x22e   : > { %v2507_v30 = vpop.eup %2506  ;;  %v2206_v34 = vmul.f32 -1.442695, %v1287_v21  ;;  %v1372_v16 = vadd.f32 %v3254_v1, %v1371_v20  ;;  %1704 = vmatpush.bf16.msra.mxu2 %v2394_v7  ;;  %v2391_v63 = vld [vmem:[%s3525_s8 + $0x48] sm:$0xff]  ;;  %vm1541_vm12 = vcmask 1042434   ;;  %vm1543_vm13 = vcmask 1043459  }
 0x22f   : > { %v3294_v35 = vpop.eup %2508  ;;  %v3298_v39 = vadd.f32 1.0, %v2507_v30  ;;  %v1482_v37 = vadd.f32 %v1481_v25, %v1480_v9 }
 0x230   : > { %v1384_v4 = vmul.f32 %v3294_v35, %v3256_v5  ;;  %2510 = vpow2.f32 %v2206_v34  ;;  %v1376_v55 = vsel %vm3328_vm15, %v3254_v1, %v1372_v16  ;;  %vm1389_vm1 = vweird.f32 %v3294_v35  ;;  %v2385_v1 = vld [vmem:[%s3525_s8 + $0x18] sm:$0xff]  ;;  %v2392_v16 = vld [vmem:[%s3525_s8 + $0x50] sm:$0xff] }
 0x231   : > { %2512 = vrcp.f32 %v3298_v39  ;;  %vm3360_vm2 = vmor %vm1388_vm0, %vm1389_vm1  ;;  %1692 = vmatpush.bf16.msrb.mxu1 %v2385_v1  ;;  %v1492_v5 = vadd.f32 %v1491_v11, %v1477_v47  ;;  %vm1403_vm4 = vweird.f32 %v3298_v39  ;;  %v1407_v34 = vand.u32 2147483647, %v3298_v39 }
 0x232   : > { %v1385_v52 = vsub.f32 1.0, %v1384_v4  ;;  %v1409_v36 = vand.u32 2147483648, %v3298_v39  ;;  %1705 = vmatpush.bf16.msra.mxu2 %v2393_v26  ;;  %v1488_v4 = vadd.f32 %v1487_v27, %v1486_v10  ;;  %v1469_v10 = vadd.f32 %v1461_v24, %v3351_v13 }
 0x233   : > { %v1288_v32 = vpop.f32.mrf.mxu0  ;;  %v1493_v45 = vrot.slane %v1492_v5, 2  ;;  %vm3394_vm7 = vcmp.eq.f32.partialorder %v1407_v34, 8.507059e+37 }
 0x234   : > { %v1386_v0 = vmul.f32 %v3294_v35, %v1385_v52  ;;  %v1289_v3 = vadd.f32 %v3229_v38, %v1288_v32  ;;  %v1381_v38 = vsel %vm3313_vm14, %v1380_v51, %v1376_v55  ;;  %v1483_v51 = vrot.slane %v1482_v37, 1 }
 0x235   : > { %v1454_v30 = vsub.f32 1.0, %v1381_v38  ;;  %1693 = vmatpush.bf16.msrb.mxu1 %v2384_v23  ;;  %v1446_v46 = vmul.f32 %v3171_v29, %v1381_v38  ;;  %v1489_v52 = vrot.slane %v1488_v4, 1  ;;  %v1494_v53 = vadd.f32 %v1493_v45, %v1492_v5 }
 0x236   : > { %v2511_v12 = vpop.eup %2510  ;;  %v1387_v14 = vadd.f32 %v3294_v35, %v1386_v0  ;;  %v2207_v15 = vmul.f32 -1.442695, %v1289_v3  ;;  %v1498_v29 = vadd.f32 %v1497_v48, %v1478_v2  ;;  %1706 = vmatpush.bf16.msra.mxu2 %v2392_v16  ;;  %v2382_v0 = vld [vmem:[%s3525_s8] sm:$0xff]  ;;  %v1484_v3 = vadd.f32 %v1483_v51, %v1482_v37 }
 0x237   : > { %v3356_v17 = vpop.eup %2512  ;;  %v3364_v21 = vadd.f32 1.0, %v2511_v12  ;;  %v1462_v41 = vmul.f32 %v3148_v62, %v1454_v30  ;;  %v1410_v62 = vor.u32 1.1754944e-38, %v1409_v36  ;;  %v1495_v7 = vrot.slane %v1494_v53, 1 }
 0x238   : > { %v1391_v28 = vsel %vm3360_vm2, %v3294_v35, %v1387_v14  ;;  %v1399_v40 = vmul.f32 %v3356_v17, %v3298_v39  ;;  %2514 = vpow2.f32 %v2207_v15  ;;  %vm1404_vm5 = vweird.f32 %v3356_v17 }
 0x239   : > { %2516 = vrcp.f32 %v3364_v21  ;;  %v1396_v35 = vsel %vm1393_vm3, %v1395_v31, %v1391_v28  ;;  %vm3400_vm8 = vmor %vm1403_vm4, %vm1404_vm5  ;;  %1694 = vmatpush.bf16.msrb.mxu1 %v2383_v58  ;;  %v1490_v8 = vadd.f32 %v1489_v52, %v1488_v4  ;;  %v1499_v9 = vrot.slane %v1498_v29, 2 }
 0x23a   : > { %v1400_v33 = vsub.f32 1.0, %v1399_v40  ;;  %v1455_v55 = vsub.f32 1.0, %v1396_v35  ;;  %v1470_v11 = vadd.f32 %v1462_v41, %v1446_v46  ;;  %vm1418_vm9 = vweird.f32 %v3364_v21  ;;  %1707 = vmatpush.bf16.msra.mxu2 %v2391_v63 }
 0x23b   : > { %v1496_v13 = vadd.f32 %v1495_v7, %v1494_v53  ;;  %v1500_v20 = vadd.f32 %v1499_v9, %v1498_v29  ;;  %v1503_v26 = vmul.f32 2.0, %v1484_v3  ;;  %v1447_v5 = vmul.f32 %v3195_v18, %v1396_v35  ;;  %v2404_v53 = vld [vmem:[%s3527_s10 + $0x30] sm:$0xff] }
 0x23c   : > { %v1401_v6 = vmul.f32 %v3356_v17, %v1400_v33  ;;  %v1463_v38 = vmul.f32 %v3162_v19, %v1455_v55  ;;  %v1504_v19 = vmul.f32 2.0, %v1490_v8  ;;  %v1424_v28 = vand.u32 2147483648, %v3364_v21 }
 0x23d   : > { %1695 = vmatpush.bf16.msrb.mxu1 %v2382_v0  ;;  %v1501_v40 = vrot.slane %v1500_v20, 1  ;;  %v1505_v24 = vmul.f32 2.0, %v1496_v13  ;;  %v1422_v2 = vand.u32 2147483647, %v3364_v21  ;;  %v1514_v58 = vadd.f32 %v1470_v11, %v1469_v10 }
 0x23e   : > { %v2515_v54 = vpop.eup %2514  ;;  %v1402_v59 = vadd.f32 %v3356_v17, %v1401_v6  ;;  %v1540_v33 = vsel %vm1539_vm6, %v1504_v19, %v1503_v26  ;;  %v1471_v36 = vadd.f32 %v1463_v38, %v1447_v5  ;;  %v1425_v37 = vor.u32 1.1754944e-38, %v1424_v28 }
 0x23f   : > { %v2517_v47 = vpop.eup %2516  ;;  %v3404_v61 = vadd.f32 1.0, %v2515_v54  ;;  %v1502_v18 = vadd.f32 %v1501_v40, %v1500_v20  ;;  %v1542_v16 = vsel %vm1541_vm12, %v1505_v24, %v1540_v33  ;;  %vm1423_vm14 = vcmp.eq.f32.partialorder %v1422_v2, 8.507059e+37 }
 0x240   : > { %v1406_v39 = vsel %vm3400_vm8, %v3356_v17, %v1402_v59  ;;  %v1414_v1 = vmul.f32 %v2517_v47, %v3364_v21  ;;  %vm1419_vm10 = vweird.f32 %v2517_v47  ;;  %v2390_v17 = vld [vmem:[%s3525_s8 + $0x40] sm:$0xff]  ;;  %v2405_v21 = vld [vmem:[%s3527_s10 + $0x38] sm:$0xff]  ;;  %v1507_v6 = vadd.f32 %v3324_v50, %v3305_v42 }
 0x241   : > { %v1411_v12 = vsel %vm3394_vm7, %v1410_v62, %v1406_v39  ;;  %2518 = vrcp.f32 %v3404_v61  ;;  %vm3434_vm11 = vmor %vm1418_vm9, %vm1419_vm10  ;;  %1708 = vmatpush.bf16.msra.mxu2 %v2390_v17  ;;  %v1506_v4 = vmul.f32 2.0, %v1502_v18  ;;  %v1437_v41 = vand.u32 2147483647, %v3404_v61  ;;  %1786 = vmatpush.bf16.msra.mxu3 %v2405_v21 }
 0x242   : > { %v1456_v14 = vsub.f32 1.0, %v1411_v12  ;;  %v1415_v15 = vsub.f32 1.0, %v1414_v1  ;;  %v1448_v23 = vmul.f32 %v3197_v49, %v1411_v12  ;;  %v1439_v51 = vand.u32 2147483648, %v3404_v61 }
 0x243   : > { %v1544_v52 = vsel %vm1543_vm13, %v1506_v4, %v1542_v16  ;;  %v1515_v59 = vrot.slane %v1514_v58, 4  ;;  %vm1433_vm0 = vweird.f32 %v3404_v61  ;;  %v1508_v42 = vrot.slane %v1507_v6, 4  ;;  %v2454_v16 = vld [vmem:[%s3526_s9] ss:$0 sm:$0xff] }
 0x244   : > { %v1464_v25 = vmul.f32 %v3164_v22, %v1456_v14  ;;  %v1416_v27 = vmul.f32 %v2517_v47, %v1415_v15  ;;  %v1554_v55 = vpack.c.bf16 %v1544_v52, %v1544_v52  ;;  %v1440_v50 = vor.u32 1.1754944e-38, %v1439_v51  ;;  %v2399_v22 = vld [vmem:[%s3527_s10 + $0x8] sm:$0xff] }
 0x245   : > { %1787 = vmatpush.bf16.msra.mxu3 %v2404_v53  ;;  %vm1438_vm2 = vcmp.eq.f32.partialorder %v1437_v41, 8.507059e+37  ;;  %v1516_v63 = vadd.f32 %v1515_v59, %v1514_v58  ;;  %v1509_v1 = vadd.f32 %v1508_v42, %v1507_v6 }
 0x246   : > { %v1472_v30 = vadd.f32 %v1464_v25, %v1448_v23  ;;  %v1417_v31 = vadd.f32 %v2517_v47, %v1416_v27  ;;  %1696 = vmatmul.bf16.vlgmr.msrb.gmra.mxu1 %v1554_v55 }
 0x247   : > { %v2519_v34 = vpop.eup %2518  ;;  %v1517_v11 = vrot.slane %v1516_v63, 2  ;;  %v1510_v15 = vrot.slane %v1509_v1, 2 }
 0x248   : > { %v1421_v49 = vsel %vm3434_vm11, %v2517_v47, %v1417_v31  ;;  %v1429_v35 = vmul.f32 %v2519_v34, %v3404_v61  ;;  %v1521_v45 = vadd.f32 %v1472_v30, %v1471_v36  ;;  %vm1434_vm15 = vweird.f32 %v2519_v34  ;;  %v2402_v61 = vld [vmem:[%s3527_s10 + $0x20] sm:$0xff] }
 0x249   : > { %v1426_v48 = vsel %vm1423_vm14, %v1425_v37, %v1421_v49  ;;  %vm1435_vm1 = vmor %vm1433_vm0, %vm1434_vm15  ;;  %1788 = vmatpush.bf16.msra.mxu3 %v2403_v60  ;;  %v1518_v17 = vadd.f32 %v1517_v11, %v1516_v63  ;;  %v1511_v26 = vadd.f32 %v1510_v15, %v1509_v1  ;;  %v2398_v49 = vld [vmem:[%s3527_s10] sm:$0xff] }
 0x24a   : > { %v1430_v46 = vsub.f32 1.0, %v1429_v35  ;;  %v1522_v32 = vrot.slane %v1521_v45, 4  ;;  %v1457_v29 = vsub.f32 1.0, %v1426_v48  ;;  %v1449_v8 = vmul.f32 %v3205_v56, %v1426_v48  ;;  %v2455_v48 = vld [vmem:[%s3528_s11] ss:$0 sm:$0xff] }
 0x24b   : > { %v1519_v56 = vrot.slane %v1518_v17, 1  ;;  %v1512_v27 = vrot.slane %v1511_v26, 1 }
 0x24c   : > { %v1431_v54 = vmul.f32 %v2519_v34, %v1430_v46  ;;  %v1523_v3 = vadd.f32 %v1522_v32, %v1521_v45  ;;  %v1465_v7 = vmul.f32 %v3186_v43, %v1457_v29  ;;  %v2401_v43 = vld [vmem:[%s3527_s10 + $0x18] sm:$0xff] }
 0x24d   : > { %1789 = vmatpush.bf16.msra.mxu3 %v2402_v61  ;;  %v1520_v5 = vadd.f32 %v1519_v56, %v1518_v17  ;;  %v1513_v24 = vadd.f32 %v1512_v27, %v1511_v26 }
 0x24e   : > { %v1432_v47 = vadd.f32 %v2519_v34, %v1431_v54  ;;  %v1524_v12 = vrot.slane %v1523_v3, 2  ;;  %v1473_v38 = vadd.f32 %v1465_v7, %v1449_v8 }
 0x24f   : > { %v1550_v2 = vsel %vm1539_vm6, %v1520_v5, %v1513_v24 }
 0x250   : > { %v1436_v62 = vsel %vm1435_vm1, %v2519_v34, %v1432_v47  ;;  %v1525_v20 = vadd.f32 %v1524_v12, %v1523_v3 }
 0x251   : > { %v1441_v0 = vsel %vm1438_vm2, %v1440_v50, %v1436_v62  ;;  %1790 = vmatpush.bf16.msra.mxu3 %v2401_v43 }
 0x252   : > { %v1458_v39 = vsub.f32 1.0, %v1441_v0  ;;  %v1450_v9 = vmul.f32 %v3207_v57, %v1441_v0  ;;  %v1526_v25 = vrot.slane %v1525_v20, 1 }
 0x254   : > { %v1466_v10 = vmul.f32 %v3188_v44, %v1458_v39  ;;  %v2400_v44 = vld [vmem:[%s3527_s10 + $0x10] sm:$0xff]  ;;  %v1527_v40 = vadd.f32 %v1526_v25, %v1525_v20 }
 0x255   : > { %1791 = vmatpush.bf16.msra.mxu3 %v2400_v44 }
 0x256   : > { %v1474_v14 = vadd.f32 %v1466_v10, %v1450_v9  ;;  %v1551_v33 = vsel %vm1541_vm12, %v1527_v40, %v1550_v2 }
 0x258   : > { %v1528_v13 = vadd.f32 %v1474_v14, %v1473_v38 }
 0x259   : > { %1792 = vmatpush.bf16.msra.mxu3 %v2399_v22 }
 0x25a   : > { %v1529_v23 = vrot.slane %v1528_v13, 4 }
 0x25c   : > { %v1530_v57 = vadd.f32 %v1529_v23, %v1528_v13 }
 0x25d   : > { %1793 = vmatpush.bf16.msra.mxu3 %v2398_v49 }
 0x25e   : > { %v1531_v19 = vrot.slane %v1530_v57, 2 }
 0x260   : > { %v1532_v28 = vadd.f32 %v1531_v19, %v1530_v57 }
 0x262   : > { %v1533_v30 = vrot.slane %v1532_v28, 1 }
 0x264   : > { %v1534_v31 = vadd.f32 %v1533_v30, %v1532_v28 }
 0x266   : > { %v1552_v34 = vsel %vm1543_vm13, %v1534_v31, %v1551_v33 }
 0x267   : > { %v1555_v36 = vpack.c.bf16 %v1552_v34, %v1552_v34 }
 0x269   : > { %1709 = vmatmul.bf16.vlgmr.msra.gmra.mxu2 %v1555_v36 }
 0x2c3   : > { %v1697_v18 = vpop.f32.mrf.mxu1 }
 0x2c4   : > { %v1698_v58 = vadd.f32 %v2454_v16, %v1697_v18 }
 0x2cb   : > { %v1699_v35 = vpop.f32.mrf.mxu1 }
 0x2ec   : > { %v1710_v37 = vpop.f32.mrf.mxu2 }
 0x2ed   : > { %v1711_v4 = vadd.f32 %v1710_v37, %v1698_v58 }
 0x2ef   : > { %vm1714_vm3 = vcmp.gt.f32.partialorder %v1711_v4, 0.0  ;;  %v1715_v45 = vmul.f32 0.01, %v1711_v4 }
 0x2f1   : > { %v1716_v21 = vsel %vm1714_vm3, %v1711_v4, %v1715_v45 }
 0x2f2   : > { %v1717_v46 = vpack.c.bf16 %v1716_v21, %v1716_v21 }
 0x2f4   : > { %v1712_v6 = vpop.f32.mrf.mxu2  ;;  %1794 = vmatmul.bf16.vlgmr.msra.gmra.mxu3 %v1717_v46 }
 0x377   : > { %v1795_v41 = vpop.f32.mrf.mxu3 }
 0x378   : > { %v1796_v51 = vadd.f32 %v2455_v48, %v1795_v41 }
 0x37a   : > { %1799 = vst [vmem:[%s443_s15] sm:$0xf] %v1796_v51 }
 0x37b   : > { %2547 = shalt.err (!%p2544_p3)
}
 0x37c   : > { %2414 = dma.vmem_to_hbm [thread:$0]  (%p2686_p5), %s1814_s17, 64, %s1816_s16, %s1801_s14  }
 0x37f   : > { %v1797_v52 = vpop.f32.mrf.mxu3 }
 0x380 PF: > { %p2420_p4 = scmp.ge.s32.totalorder %s2582_s24, 2  ;;  %s1827_s28 = sand.u32 1, %s2570_s21  }
 0x381   : > { %s1828_s29 = scalar_lea.sflag [#allocation3], %s1827_s28 }
 0x382   : > { %p2417_p7 = pnand %p2420_p4, %p2690_p6 }
 0x384   : > { %p2418_p8 = pneg %p2417_p7 }
 0x386   : > { %2565 = dma.done.wait (%p2418_p8), %s1828_s29, 64  }
 0x387   : > { %2567 = vsyncadd (%p2418_p8), %s1828_s29, 4294967232  ;;  %s3559_s24 = sld [smem:[#allocation6_spill]]  ;;  %s3562_s21 = smov %s2574_s22 }
 0x388   : > { %s3560_s15 = sld [smem:[#allocation5_spill]] }
 0x389   : > { %s3561_s23 = sld [smem:[#allocation7_spill]] }
 0x38d   : > { %p22_p9 = scmp.ge.s32.totalorder %s3559_s24, 4  }
 0x38e   : > { %s3563_s22 = smov %s3560_s15 }
 0x38f   :  { %24 = sbr.rel (!%p22_p9) target bundleno = 3 (0x3), region = 109 }
 0x394   :  { %1834 = vsyncpa [#allocation3], 1 }
 0x395   :  { %1836 = vsyncpa [#allocation3 + $0x1], 1 }

</bundles_post_ra>
